<compile_context>
chip_gen: v7x
topology: tpu7x:2x2x1
jax: 0.10.0
libtpu: 0.0.40
codegen_flags: <defaults>
</compile_context>

<pallas_src>
import jax
import jax.numpy as jnp
import numpy as np
from jax.experimental import pallas as pl
from jax.experimental.pallas import tpu as pltpu


def _sigmoid(z):
    return 1.0 / (1.0 + jnp.exp(-z))


def decoder_kernel(x_ref, tag_ref, wx0_ref, wtag_ref, wih_ref, whh_ref,
                   b_ref, wlin_ref, blin_ref,
                   loss_ref, pred_ref,
                   h_scr, c_scr, oh_scr, loss_scr, xproj_scr):
    """Single invocation: full greedy-decode + loss over (T, B).

    x_ref    : (T*B, F)       time-major features, flattened over (t, b)
    tag_ref  : (T, B, 1)      gold tags (int32), 0 = ignore_index
    wx0_ref  : (F, 4H)        layer-0 input weight, x part (pre-transposed)
    wtag_ref : (C, 4H)        layer-0 input weight, one-hot-tag part
    wih_ref  : (max(L-1,1), H, 4H)  input weights of layers 1..L-1
    whh_ref  : (L, H, 4H)     recurrent weights
    b_ref    : (L, 1, 4H)     combined bias b_ih + b_hh
    wlin_ref : (H, C)         linear head weight (pre-transposed)
    blin_ref : (1, C)         linear head bias
    loss_ref : (1, 1)         summed cross-entropy loss (output)
    pred_ref : (T, B, 1)      greedy predictions (output, int32)
    """
    T, B, _ = tag_ref.shape
    L, H, _H4 = whh_ref.shape
    C = wtag_ref.shape[0]

    lane = jax.lax.broadcasted_iota(jnp.int32, (B, C), 1)

    # ---- hoisted input projection: one big matmul off the serial path ------
    # (T*B, F) @ (F, 4H) + b_l0  (layer-0 bias folded in here once)
    xproj_scr[...] = (
        jnp.dot(x_ref[...].astype(jnp.float32), wx0_ref[...],
                preferred_element_type=jnp.float32) + b_ref[0])

    # ---- init recurrent state: h = c = 0, previous tag = 0 (one-hot col 0) --
    h_scr[...] = jnp.zeros_like(h_scr)
    c_scr[...] = jnp.zeros_like(c_scr)
    oh_scr[...] = (lane == 0).astype(jnp.float32)
    loss_scr[...] = jnp.zeros_like(loss_scr)

    @pl.loop(0, T)
    def _step(t):
        oh = oh_scr[...]                              # (B, C) prev-pred one-hot
        off = pl.multiple_of(t * B, B)

        # Recurrent contributions of ALL layers use h(t-1) -> issue them
        # before the layer chain so the MXU overlaps the gate nonlinearities.
        rec = [jnp.dot(h_scr[l], whh_ref[l], preferred_element_type=jnp.float32)
               for l in range(L)]                     # static unroll

        h_top = None
        for l in range(L):                            # static layer unroll
            if l == 0:
                # cat([x_t, onehot]) @ W_ih_l0^T realised as precomputed
                # x-projection + a tiny one-hot matmul (no in-kernel concat).
                gates = (xproj_scr[pl.ds(off, B), :]
                         + jnp.dot(oh, wtag_ref[...],
                                   preferred_element_type=jnp.float32)
                         + rec[0])
            else:
                gates = (jnp.dot(h_top, wih_ref[l - 1],
                                 preferred_element_type=jnp.float32)
                         + rec[l] + b_ref[l])         # (B, 4H)
            # PyTorch LSTM gate order: input, forget, cell(g), output
            i_g = _sigmoid(gates[:, 0 * H:1 * H])
            f_g = _sigmoid(gates[:, 1 * H:2 * H])
            g_g = jnp.tanh(gates[:, 2 * H:3 * H])
            o_g = _sigmoid(gates[:, 3 * H:4 * H])
            c_new = f_g * c_scr[l] + i_g * g_g
            h_new = o_g * jnp.tanh(c_new)
            c_scr[l] = c_new
            h_scr[l] = h_new
            h_top = h_new

        # TODO(synk): nn.Dropout(p=0.5) after the LSTM is an eval-mode identity.
        logits = (jnp.dot(h_top, wlin_ref[...],
                          preferred_element_type=jnp.float32)
                  + blin_ref[...])                    # (B, C)

        # greedy prediction (first index of the max) -> feedback one-hot
        m = jnp.max(logits, axis=1, keepdims=True)    # (B, 1)
        idx = jnp.min(jnp.where(logits == m, lane, C),
                      axis=1, keepdims=True)          # (B, 1) int32
        oh_scr[...] = (lane == idx).astype(jnp.float32)
        pred_ref[t] = idx

        # CrossEntropyLoss(ignore_index=0, reduction='sum') against tag[t]
        tag_t = tag_ref[t]                            # (B, 1) int32
        lse = m + jnp.log(jnp.sum(jnp.exp(logits - m),
                                  axis=1, keepdims=True))          # (B, 1)
        picked = jnp.sum(jnp.where(lane == tag_t, logits, 0.0),
                         axis=1, keepdims=True)                    # (B, 1)
        valid = (tag_t != 0).astype(jnp.float32)
        loss_scr[...] = loss_scr[...] + valid * (lse - picked)

    loss_ref[...] = jnp.sum(loss_scr[...], axis=0, keepdims=True)


def decoder_forward(x, tag, params):
    """x: (B, T, F) f32, tag: (B, T) int -> (scalar loss, preds (B, T) int32)."""
    B, T, F = x.shape
    L, H, H4 = params["whh"].shape
    C = params["wtag"].shape[0]

    # time-major, flattened over (t, b) so the kernel can do one big input
    # projection matmul; row t*B + b corresponds to (time t, batch b).
    x_flat = jnp.transpose(x, (1, 0, 2)).reshape(T * B, F).astype(jnp.float32)
    tag_tm = jnp.transpose(tag, (1, 0)).astype(jnp.int32)[:, :, None]  # (T,B,1)

    wih_rest = params["wih_rest"]
    if wih_rest.shape[0] == 0:           # single-layer LSTM: pass unused dummy
        wih_rest = jnp.zeros((1, H, H4), jnp.float32)

    vmem = pl.BlockSpec(memory_space=pltpu.MemorySpace.VMEM)
    loss, preds = pl.pallas_call(
        decoder_kernel,
        out_shape=(jax.ShapeDtypeStruct((1, 1), jnp.float32),
                   jax.ShapeDtypeStruct((T, B, 1), jnp.int32)),
        in_specs=[vmem] * 9,
        out_specs=(vmem, vmem),
        scratch_shapes=[
            pltpu.VMEM((L, B, H), jnp.float32),    # h state (all layers)
            pltpu.VMEM((L, B, H), jnp.float32),    # c state (all layers)
            pltpu.VMEM((B, C), jnp.float32),       # one-hot of prev prediction
            pltpu.VMEM((B, 1), jnp.float32),       # per-row loss accumulator
            pltpu.VMEM((T * B, H4), jnp.float32),  # hoisted layer-0 x @ W_x
        ],
    )(x_flat, tag_tm, params["wx0"], params["wtag"], wih_rest,
      params["whh"], params["b"], params["wlin"], params["blin"])

    return loss[0, 0], jnp.transpose(preds[:, :, 0], (1, 0))


def reference_forward(x, tag, params):
    """Pure-JAX mirror of decoder.forward (eval mode), same param layout."""
    B, T, _F = x.shape
    wx0, wtag = params["wx0"], params["wtag"]
    wih, whh, b = params["wih_rest"], params["whh"], params["b"]
    wlin, blin = params["wlin"], params["blin"]
    L, H, _ = whh.shape
    C = wtag.shape[0]

    h = [jnp.zeros((B, H), jnp.float32) for _ in range(L)]
    c = [jnp.zeros((B, H), jnp.float32) for _ in range(L)]
    pred = jnp.zeros((B,), jnp.int32)
    loss = jnp.float32(0.0)
    preds = []
    for t in range(T):
        oh = (jnp.arange(C)[None, :] == pred[:, None]).astype(jnp.float32)
        h_top = None
        for l in range(L):
            if l == 0:
                gates = x[:, t, :] @ wx0 + oh @ wtag
            else:
                gates = h_top @ wih[l - 1]
            gates = gates + h[l] @ whh[l] + b[l]
            i_g = _sigmoid(gates[:, 0 * H:1 * H])
            f_g = _sigmoid(gates[:, 1 * H:2 * H])
            g_g = jnp.tanh(gates[:, 2 * H:3 * H])
            o_g = _sigmoid(gates[:, 3 * H:4 * H])
            c[l] = f_g * c[l] + i_g * g_g
            h[l] = o_g * jnp.tanh(c[l])
            h_top = h[l]
        logits = h_top @ wlin + blin                  # (B, C)
        pred = jnp.argmax(logits, axis=1).astype(jnp.int32)
        preds.append(pred)
        m = jnp.max(logits, axis=1)
        lse = m + jnp.log(jnp.sum(jnp.exp(logits - m[:, None]), axis=1))
        tgt = tag[:, t].astype(jnp.int32)
        picked = jnp.take_along_axis(logits, tgt[:, None], axis=1)[:, 0]
        valid = (tgt != 0).astype(jnp.float32)
        loss = loss + jnp.sum(valid * (lse - picked))
    return loss, jnp.stack(preds, axis=1)             # (B, T)


if __name__ == "__main__":
    # Small deterministic configuration.
    B, T = 8, 12
    feature_size = 32
    num_classes = 16
    hidden_size = 128          # multiple of 128 -> lane-aligned gate slices
    decoder_layers = 2

    key = jax.random.PRNGKey(0)
    ks = jax.random.split(key, 9)

    H4 = 4 * hidden_size
    s = 0.1
    params = {
        # layer-0 input weight split into x-part / tag-one-hot part, (In, 4H)
        "wx0":  s * jax.random.normal(ks[0], (feature_size, H4), jnp.float32),
        "wtag": s * jax.random.normal(ks[1], (num_classes, H4), jnp.float32),
        # input weights of layers 1..L-1, stacked (L-1, H, 4H)
        "wih_rest": s * jax.random.normal(
            ks[2], (decoder_layers - 1, hidden_size, H4), jnp.float32),
        # recurrent weights, stacked (L, H, 4H)
        "whh": s * jax.random.normal(
            ks[3], (decoder_layers, hidden_size, H4), jnp.float32),
        # combined bias (b_ih + b_hh) per layer, (L, 1, 4H)
        "b": 0.05 * jax.random.normal(
            ks[4], (decoder_layers, 1, H4), jnp.float32),
        # linear head
        "wlin": s * jax.random.normal(
            ks[5], (hidden_size, num_classes), jnp.float32),
        "blin": 0.05 * jax.random.normal(ks[6], (1, num_classes), jnp.float32),
    }

    x = jax.random.normal(ks[7], (B, T, feature_size), jnp.float32)
    tag = jax.random.randint(ks[8], (B, T), 0, num_classes, dtype=jnp.int32)

    loss, preds = decoder_forward(x, tag, params)
    loss = jax.block_until_ready(loss)
    preds = jax.block_until_ready(preds)

    ref_loss, ref_preds = reference_forward(x, tag, params)
    ref_loss = jax.block_until_ready(ref_loss)

    np.testing.assert_allclose(np.asarray(loss), np.asarray(ref_loss),
                               rtol=1e-3, atol=1e-3)
    np.testing.assert_array_equal(np.asarray(preds), np.asarray(ref_preds))
    print("KERNEL_OK")
</pallas_src>

<mosaic_0001>
module attributes {stable_mosaic.version = 11 : i64} {
  func.func @decoder_kernel(%arg0: memref<96x32xf32, #tpu.memory_space<vmem>>, %arg1: memref<12x8x1xi32, #tpu.memory_space<vmem>>, %arg2: memref<32x512xf32, #tpu.memory_space<vmem>>, %arg3: memref<16x512xf32, #tpu.memory_space<vmem>>, %arg4: memref<1x128x512xf32, #tpu.memory_space<vmem>>, %arg5: memref<2x128x512xf32, #tpu.memory_space<vmem>>, %arg6: memref<2x1x512xf32, #tpu.memory_space<vmem>>, %arg7: memref<128x16xf32, #tpu.memory_space<vmem>>, %arg8: memref<1x16xf32, #tpu.memory_space<vmem>>, %arg9: memref<1x1xf32, #tpu.memory_space<vmem>>, %arg10: memref<12x8x1xi32, #tpu.memory_space<vmem>>, %arg11: memref<2x8x128xf32, #tpu.memory_space<vmem>>, %arg12: memref<2x8x128xf32, #tpu.memory_space<vmem>>, %arg13: memref<8x16xf32, #tpu.memory_space<vmem>>, %arg14: memref<8x1xf32, #tpu.memory_space<vmem>>, %arg15: memref<96x512xf32, #tpu.memory_space<vmem>>) attributes {dimension_semantics = [], scalar_prefetch = 0 : i64, scratch_operands = 5 : i64, tpu.core_type = #tpu.core_type<tc>} {
    %0 = tpu.iota {dimensions = array<i32: 1>} : vector<8x16xi32>
    %c0 = arith.constant 0 : index
    %c0_0 = arith.constant 0 : index
    %1 = vector.load %arg0[%c0, %c0_0] : memref<96x32xf32, #tpu.memory_space<vmem>>, vector<96x32xf32>
    %c0_1 = arith.constant 0 : index
    %c0_2 = arith.constant 0 : index
    %2 = vector.load %arg2[%c0_1, %c0_2] : memref<32x512xf32, #tpu.memory_space<vmem>>, vector<32x512xf32>
    %cst = arith.constant dense<0.000000e+00> : vector<96x512xf32>
    %3 = tpu.matmul %1, %2, %cst {dimension_numbers = #tpu.dot_dimension_numbers<[1], [0], [0], [1], [0, 0, 1, 1], [], []>} : vector<96x32xf32>, vector<32x512xf32>, vector<96x512xf32> -> vector<96x512xf32>
    %c0_3 = arith.constant 0 : index
    %c0_4 = arith.constant 0 : index
    %c0_5 = arith.constant 0 : index
    %4 = vector.load %arg6[%c0_3, %c0_4, %c0_5] : memref<2x1x512xf32, #tpu.memory_space<vmem>>, vector<1x1x512xf32>
    %5 = vector.shape_cast %4 : vector<1x1x512xf32> to vector<1x512xf32>
    %6 = vector.broadcast %5 : vector<1x512xf32> to vector<96x512xf32>
    %7 = arith.addf %3, %6 : vector<96x512xf32>
    %c0_6 = arith.constant 0 : index
    %c0_7 = arith.constant 0 : index
    %8 = vector.load %arg15[%c0_6, %c0_7] : memref<96x512xf32, #tpu.memory_space<vmem>>, vector<96x512xf32>
    tpu.vector_store %arg15[%c0_6, %c0_7], %7 {strides = array<i32>} : memref<96x512xf32, #tpu.memory_space<vmem>>, vector<96x512xf32>,
    %cst_8 = arith.constant 0.000000e+00 : f32
    %9 = vector.broadcast %cst_8 : f32 to vector<2x8x128xf32>
    %c0_9 = arith.constant 0 : index
    %c0_10 = arith.constant 0 : index
    %c0_11 = arith.constant 0 : index
    %10 = vector.load %arg11[%c0_9, %c0_10, %c0_11] : memref<2x8x128xf32, #tpu.memory_space<vmem>>, vector<2x8x128xf32>
    tpu.vector_store %arg11[%c0_9, %c0_10, %c0_11], %9 {strides = array<i32>} : memref<2x8x128xf32, #tpu.memory_space<vmem>>, vector<2x8x128xf32>,
    %cst_12 = arith.constant 0.000000e+00 : f32
    %11 = vector.broadcast %cst_12 : f32 to vector<2x8x128xf32>
    %c0_13 = arith.constant 0 : index
    %c0_14 = arith.constant 0 : index
    %c0_15 = arith.constant 0 : index
    %12 = vector.load %arg12[%c0_13, %c0_14, %c0_15] : memref<2x8x128xf32, #tpu.memory_space<vmem>>, vector<2x8x128xf32>
    tpu.vector_store %arg12[%c0_13, %c0_14, %c0_15], %11 {strides = array<i32>} : memref<2x8x128xf32, #tpu.memory_space<vmem>>, vector<2x8x128xf32>,
    %c0_i32 = arith.constant 0 : i32
    %13 = vector.broadcast %c0_i32 : i32 to vector<8x16xi32>
    %14 = arith.cmpi eq, %0, %13 : vector<8x16xi32>
    %15 = arith.extui %14 : vector<8x16xi1> to vector<8x16xi32>
    %16 = arith.sitofp %15 : vector<8x16xi32> to vector<8x16xf32>
    %c0_16 = arith.constant 0 : index
    %c0_17 = arith.constant 0 : index
    %17 = vector.load %arg13[%c0_16, %c0_17] : memref<8x16xf32, #tpu.memory_space<vmem>>, vector<8x16xf32>
    tpu.vector_store %arg13[%c0_16, %c0_17], %16 {strides = array<i32>} : memref<8x16xf32, #tpu.memory_space<vmem>>, vector<8x16xf32>,
    %cst_18 = arith.constant 0.000000e+00 : f32
    %18 = vector.broadcast %cst_18 : f32 to vector<8x1xf32>
    %c0_19 = arith.constant 0 : index
    %c0_20 = arith.constant 0 : index
    %19 = vector.load %arg14[%c0_19, %c0_20] : memref<8x1xf32, #tpu.memory_space<vmem>>, vector<8x1xf32>
    tpu.vector_store %arg14[%c0_19, %c0_20], %18 {strides = array<i32>} : memref<8x1xf32, #tpu.memory_space<vmem>>, vector<8x1xf32>,
    %c0_i32_21 = arith.constant 0 : i32
    %c12_i32 = arith.constant 12 : i32
    %20 = arith.addi %c0_i32_21, %c12_i32 : i32
    %c1_i32 = arith.constant 1 : i32
    scf.for %arg16 = %c0_i32_21 to %20 step %c1_i32  : i32 {
      %c1_i32_28 = arith.constant 1 : i32
      %25 = arith.muli %arg16, %c1_i32_28 : i32
      %c0_i32_29 = arith.constant 0 : i32
      %26 = arith.addi %c0_i32_29, %25 : i32
      %c0_30 = arith.constant 0 : index
      %c0_31 = arith.constant 0 : index
      %27 = vector.load %arg13[%c0_30, %c0_31] : memref<8x16xf32, #tpu.memory_space<vmem>>, vector<8x16xf32>
      %c8_i32 = arith.constant 8 : i32
      %28 = arith.muli %26, %c8_i32 : i32
      %29 = tpu.assume_multiple %28, 8 : i32
      %c0_32 = arith.constant 0 : index
      %c0_33 = arith.constant 0 : index
      %c0_34 = arith.constant 0 : index
      %30 = vector.load %arg11[%c0_32, %c0_33, %c0_34] : memref<2x8x128xf32, #tpu.memory_space<vmem>>, vector<1x8x128xf32>
      %31 = vector.shape_cast %30 : vector<1x8x128xf32> to vector<8x128xf32>
      %c0_35 = arith.constant 0 : index
      %c0_36 = arith.constant 0 : index
      %c0_37 = arith.constant 0 : index
      %32 = vector.load %arg5[%c0_35, %c0_36, %c0_37] : memref<2x128x512xf32, #tpu.memory_space<vmem>>, vector<1x128x512xf32>
      %33 = vector.shape_cast %32 : vector<1x128x512xf32> to vector<128x512xf32>
      %cst_38 = arith.constant dense<0.000000e+00> : vector<8x512xf32>
      %34 = tpu.matmul %31, %33, %cst_38 {dimension_numbers = #tpu.dot_dimension_numbers<[1], [0], [0], [1], [0, 0, 1, 1], [], []>} : vector<8x128xf32>, vector<128x512xf32>, vector<8x512xf32> -> vector<8x512xf32>
      %c1 = arith.constant 1 : index
      %c0_39 = arith.constant 0 : index
      %c0_40 = arith.constant 0 : index
      %35 = vector.load %arg11[%c1, %c0_39, %c0_40] : memref<2x8x128xf32, #tpu.memory_space<vmem>>, vector<1x8x128xf32>
      %36 = vector.shape_cast %35 : vector<1x8x128xf32> to vector<8x128xf32>
      %c1_41 = arith.constant 1 : index
      %c0_42 = arith.constant 0 : index
      %c0_43 = arith.constant 0 : index
      %37 = vector.load %arg5[%c1_41, %c0_42, %c0_43] : memref<2x128x512xf32, #tpu.memory_space<vmem>>, vector<1x128x512xf32>
      %38 = vector.shape_cast %37 : vector<1x128x512xf32> to vector<128x512xf32>
      %cst_44 = arith.constant dense<0.000000e+00> : vector<8x512xf32>
      %39 = tpu.matmul %36, %38, %cst_44 {dimension_numbers = #tpu.dot_dimension_numbers<[1], [0], [0], [1], [0, 0, 1, 1], [], []>} : vector<8x128xf32>, vector<128x512xf32>, vector<8x512xf32> -> vector<8x512xf32>
      %40 = arith.index_cast %29 : i32 to index
      %c0_45 = arith.constant 0 : index
      %41 = vector.load %arg15[%40, %c0_45] : memref<96x512xf32, #tpu.memory_space<vmem>>, vector<8x512xf32>
      %c0_46 = arith.constant 0 : index
      %c0_47 = arith.constant 0 : index
      %42 = vector.load %arg3[%c0_46, %c0_47] : memref<16x512xf32, #tpu.memory_space<vmem>>, vector<16x512xf32>
      %cst_48 = arith.constant dense<0.000000e+00> : vector<8x512xf32>
      %43 = tpu.matmul %27, %42, %cst_48 {dimension_numbers = #tpu.dot_dimension_numbers<[1], [0], [0], [1], [0, 0, 1, 1], [], []>} : vector<8x16xf32>, vector<16x512xf32>, vector<8x512xf32> -> vector<8x512xf32>
      %44 = arith.addf %41, %43 : vector<8x512xf32>
      %45 = arith.addf %44, %34 : vector<8x512xf32>
      %46 = vector.extract_strided_slice %45 {offsets = [0, 0], sizes = [8, 128], strides = [1, 1]} : vector<8x512xf32> to vector<8x128xf32>
      %cst_49 = arith.constant 0.000000e+00 : f32
      %47 = vector.broadcast %cst_49 : f32 to vector<8x128xf32>
      %48 = arith.subf %47, %46 : vector<8x128xf32>
      %49 = math.exp %48 : vector<8x128xf32>
      %cst_50 = arith.constant 1.000000e+00 : f32
      %50 = vector.broadcast %cst_50 : f32 to vector<8x128xf32>
      %51 = arith.addf %50, %49 : vector<8x128xf32>
      %cst_51 = arith.constant 1.000000e+00 : f32
      %52 = vector.broadcast %cst_51 : f32 to vector<8x128xf32>
      %53 = arith.divf %52, %51 : vector<8x128xf32>
      %54 = vector.extract_strided_slice %45 {offsets = [0, 128], sizes = [8, 128], strides = [1, 1]} : vector<8x512xf32> to vector<8x128xf32>
      %cst_52 = arith.constant 0.000000e+00 : f32
      %55 = vector.broadcast %cst_52 : f32 to vector<8x128xf32>
      %56 = arith.subf %55, %54 : vector<8x128xf32>
      %57 = math.exp %56 : vector<8x128xf32>
      %cst_53 = arith.constant 1.000000e+00 : f32
      %58 = vector.broadcast %cst_53 : f32 to vector<8x128xf32>
      %59 = arith.addf %58, %57 : vector<8x128xf32>
      %cst_54 = arith.constant 1.000000e+00 : f32
      %60 = vector.broadcast %cst_54 : f32 to vector<8x128xf32>
      %61 = arith.divf %60, %59 : vector<8x128xf32>
      %62 = vector.extract_strided_slice %45 {offsets = [0, 256], sizes = [8, 128], strides = [1, 1]} : vector<8x512xf32> to vector<8x128xf32>
      %63 = math.tanh %62 : vector<8x128xf32>
      %64 = vector.extract_strided_slice %45 {offsets = [0, 384], sizes = [8, 128], strides = [1, 1]} : vector<8x512xf32> to vector<8x128xf32>
      %cst_55 = arith.constant 0.000000e+00 : f32
      %65 = vector.broadcast %cst_55 : f32 to vector<8x128xf32>
      %66 = arith.subf %65, %64 : vector<8x128xf32>
      %67 = math.exp %66 : vector<8x128xf32>
      %cst_56 = arith.constant 1.000000e+00 : f32
      %68 = vector.broadcast %cst_56 : f32 to vector<8x128xf32>
      %69 = arith.addf %68, %67 : vector<8x128xf32>
      %cst_57 = arith.constant 1.000000e+00 : f32
      %70 = vector.broadcast %cst_57 : f32 to vector<8x128xf32>
      %71 = arith.divf %70, %69 : vector<8x128xf32>
      %c0_58 = arith.constant 0 : index
      %c0_59 = arith.constant 0 : index
      %c0_60 = arith.constant 0 : index
      %72 = vector.load %arg12[%c0_58, %c0_59, %c0_60] : memref<2x8x128xf32, #tpu.memory_space<vmem>>, vector<1x8x128xf32>
      %73 = vector.shape_cast %72 : vector<1x8x128xf32> to vector<8x128xf32>
      %74 = arith.mulf %61, %73 : vector<8x128xf32>
      %75 = arith.mulf %53, %63 : vector<8x128xf32>
      %76 = arith.addf %74, %75 : vector<8x128xf32>
      %77 = math.tanh %76 : vector<8x128xf32>
      %78 = arith.mulf %71, %77 : vector<8x128xf32>
      %c0_61 = arith.constant 0 : index
      %c0_62 = arith.constant 0 : index
      %c0_63 = arith.constant 0 : index
      %79 = vector.load %arg12[%c0_61, %c0_62, %c0_63] : memref<2x8x128xf32, #tpu.memory_space<vmem>>, vector<1x8x128xf32>
      %80 = vector.shape_cast %79 : vector<1x8x128xf32> to vector<8x128xf32>
      %81 = vector.shape_cast %76 : vector<8x128xf32> to vector<1x8x128xf32>
      tpu.vector_store %arg12[%c0_61, %c0_62, %c0_63], %81 {strides = array<i32>} : memref<2x8x128xf32, #tpu.memory_space<vmem>>, vector<1x8x128xf32>,
      %c0_64 = arith.constant 0 : index
      %c0_65 = arith.constant 0 : index
      %c0_66 = arith.constant 0 : index
      %82 = vector.load %arg11[%c0_64, %c0_65, %c0_66] : memref<2x8x128xf32, #tpu.memory_space<vmem>>, vector<1x8x128xf32>
      %83 = vector.shape_cast %82 : vector<1x8x128xf32> to vector<8x128xf32>
      %84 = vector.shape_cast %78 : vector<8x128xf32> to vector<1x8x128xf32>
      tpu.vector_store %arg11[%c0_64, %c0_65, %c0_66], %84 {strides = array<i32>} : memref<2x8x128xf32, #tpu.memory_space<vmem>>, vector<1x8x128xf32>,
      %c0_67 = arith.constant 0 : index
      %c0_68 = arith.constant 0 : index
      %c0_69 = arith.constant 0 : index
      %85 = vector.load %arg4[%c0_67, %c0_68, %c0_69] : memref<1x128x512xf32, #tpu.memory_space<vmem>>, vector<1x128x512xf32>
      %86 = vector.shape_cast %85 : vector<1x128x512xf32> to vector<128x512xf32>
      %cst_70 = arith.constant dense<0.000000e+00> : vector<8x512xf32>
      %87 = tpu.matmul %78, %86, %cst_70 {dimension_numbers = #tpu.dot_dimension_numbers<[1], [0], [0], [1], [0, 0, 1, 1], [], []>} : vector<8x128xf32>, vector<128x512xf32>, vector<8x512xf32> -> vector<8x512xf32>
      %88 = arith.addf %87, %39 : vector<8x512xf32>
      %c1_71 = arith.constant 1 : index
      %c0_72 = arith.constant 0 : index
      %c0_73 = arith.constant 0 : index
      %89 = vector.load %arg6[%c1_71, %c0_72, %c0_73] : memref<2x1x512xf32, #tpu.memory_space<vmem>>, vector<1x1x512xf32>
      %90 = vector.shape_cast %89 : vector<1x1x512xf32> to vector<1x512xf32>
      %91 = vector.broadcast %90 : vector<1x512xf32> to vector<8x512xf32>
      %92 = arith.addf %88, %91 : vector<8x512xf32>
      %93 = vector.extract_strided_slice %92 {offsets = [0, 0], sizes = [8, 128], strides = [1, 1]} : vector<8x512xf32> to vector<8x128xf32>
      %cst_74 = arith.constant 0.000000e+00 : f32
      %94 = vector.broadcast %cst_74 : f32 to vector<8x128xf32>
      %95 = arith.subf %94, %93 : vector<8x128xf32>
      %96 = math.exp %95 : vector<8x128xf32>
      %cst_75 = arith.constant 1.000000e+00 : f32
      %97 = vector.broadcast %cst_75 : f32 to vector<8x128xf32>
      %98 = arith.addf %97, %96 : vector<8x128xf32>
      %cst_76 = arith.constant 1.000000e+00 : f32
      %99 = vector.broadcast %cst_76 : f32 to vector<8x128xf32>
      %100 = arith.divf %99, %98 : vector<8x128xf32>
      %101 = vector.extract_strided_slice %92 {offsets = [0, 128], sizes = [8, 128], strides = [1, 1]} : vector<8x512xf32> to vector<8x128xf32>
      %cst_77 = arith.constant 0.000000e+00 : f32
      %102 = vector.broadcast %cst_77 : f32 to vector<8x128xf32>
      %103 = arith.subf %102, %101 : vector<8x128xf32>
      %104 = math.exp %103 : vector<8x128xf32>
      %cst_78 = arith.constant 1.000000e+00 : f32
      %105 = vector.broadcast %cst_78 : f32 to vector<8x128xf32>
      %106 = arith.addf %105, %104 : vector<8x128xf32>
      %cst_79 = arith.constant 1.000000e+00 : f32
      %107 = vector.broadcast %cst_79 : f32 to vector<8x128xf32>
      %108 = arith.divf %107, %106 : vector<8x128xf32>
      %109 = vector.extract_strided_slice %92 {offsets = [0, 256], sizes = [8, 128], strides = [1, 1]} : vector<8x512xf32> to vector<8x128xf32>
      %110 = math.tanh %109 : vector<8x128xf32>
      %111 = vector.extract_strided_slice %92 {offsets = [0, 384], sizes = [8, 128], strides = [1, 1]} : vector<8x512xf32> to vector<8x128xf32>
      %cst_80 = arith.constant 0.000000e+00 : f32
      %112 = vector.broadcast %cst_80 : f32 to vector<8x128xf32>
      %113 = arith.subf %112, %111 : vector<8x128xf32>
      %114 = math.exp %113 : vector<8x128xf32>
      %cst_81 = arith.constant 1.000000e+00 : f32
      %115 = vector.broadcast %cst_81 : f32 to vector<8x128xf32>
      %116 = arith.addf %115, %114 : vector<8x128xf32>
      %cst_82 = arith.constant 1.000000e+00 : f32
      %117 = vector.broadcast %cst_82 : f32 to vector<8x128xf32>
      %118 = arith.divf %117, %116 : vector<8x128xf32>
      %c1_83 = arith.constant 1 : index
      %c0_84 = arith.constant 0 : index
      %c0_85 = arith.constant 0 : index
      %119 = vector.load %arg12[%c1_83, %c0_84, %c0_85] : memref<2x8x128xf32, #tpu.memory_space<vmem>>, vector<1x8x128xf32>
      %120 = vector.shape_cast %119 : vector<1x8x128xf32> to vector<8x128xf32>
      %121 = arith.mulf %108, %120 : vector<8x128xf32>
      %122 = arith.mulf %100, %110 : vector<8x128xf32>
      %123 = arith.addf %121, %122 : vector<8x128xf32>
      %124 = math.tanh %123 : vector<8x128xf32>
      %125 = arith.mulf %118, %124 : vector<8x128xf32>
      %c1_86 = arith.constant 1 : index
      %c0_87 = arith.constant 0 : index
      %c0_88 = arith.constant 0 : index
      %126 = vector.load %arg12[%c1_86, %c0_87, %c0_88] : memref<2x8x128xf32, #tpu.memory_space<vmem>>, vector<1x8x128xf32>
      %127 = vector.shape_cast %126 : vector<1x8x128xf32> to vector<8x128xf32>
      %128 = vector.shape_cast %123 : vector<8x128xf32> to vector<1x8x128xf32>
      tpu.vector_store %arg12[%c1_86, %c0_87, %c0_88], %128 {strides = array<i32>} : memref<2x8x128xf32, #tpu.memory_space<vmem>>, vector<1x8x128xf32>,
      %c1_89 = arith.constant 1 : index
      %c0_90 = arith.constant 0 : index
      %c0_91 = arith.constant 0 : index
      %129 = vector.load %arg11[%c1_89, %c0_90, %c0_91] : memref<2x8x128xf32, #tpu.memory_space<vmem>>, vector<1x8x128xf32>
      %130 = vector.shape_cast %129 : vector<1x8x128xf32> to vector<8x128xf32>
      %131 = vector.shape_cast %125 : vector<8x128xf32> to vector<1x8x128xf32>
      tpu.vector_store %arg11[%c1_89, %c0_90, %c0_91], %131 {strides = array<i32>} : memref<2x8x128xf32, #tpu.memory_space<vmem>>, vector<1x8x128xf32>,
      %c0_92 = arith.constant 0 : index
      %c0_93 = arith.constant 0 : index
      %132 = vector.load %arg7[%c0_92, %c0_93] : memref<128x16xf32, #tpu.memory_space<vmem>>, vector<128x16xf32>
      %cst_94 = arith.constant dense<0.000000e+00> : vector<8x16xf32>
      %133 = tpu.matmul %125, %132, %cst_94 {dimension_numbers = #tpu.dot_dimension_numbers<[1], [0], [0], [1], [0, 0, 1, 1], [], []>} : vector<8x128xf32>, vector<128x16xf32>, vector<8x16xf32> -> vector<8x16xf32>
      %c0_95 = arith.constant 0 : index
      %c0_96 = arith.constant 0 : index
      %134 = vector.load %arg8[%c0_95, %c0_96] : memref<1x16xf32, #tpu.memory_space<vmem>>, vector<1x16xf32>
      %135 = vector.broadcast %134 : vector<1x16xf32> to vector<8x16xf32>
      %136 = arith.addf %133, %135 : vector<8x16xf32>
      %cst_97 = arith.constant dense<0xFF800000> : vector<8xf32>
      %137 = vector.multi_reduction <maximumf>, %136, %cst_97 [1] : vector<8x16xf32> to vector<8xf32>
      %138 = vector.shape_cast %137 : vector<8xf32> to vector<8x1xf32>
      %139 = vector.broadcast %138 : vector<8x1xf32> to vector<8x16xf32>
      %140 = arith.cmpf oeq, %136, %139 : vector<8x16xf32>
      %c16_i32 = arith.constant 16 : i32
      %141 = vector.broadcast %c16_i32 : i32 to vector<8x16xi32>
      %142 = arith.select %140, %0, %141 : vector<8x16xi1>, vector<8x16xi32>
      %cst_98 = arith.constant dense<2147483647> : vector<8xi32>
      %143 = vector.multi_reduction <minsi>, %142, %cst_98 [1] : vector<8x16xi32> to vector<8xi32>
      %144 = vector.shape_cast %143 : vector<8xi32> to vector<8x1xi32>
      %145 = vector.broadcast %144 : vector<8x1xi32> to vector<8x16xi32>
      %146 = arith.cmpi eq, %0, %145 : vector<8x16xi32>
      %147 = arith.extui %146 : vector<8x16xi1> to vector<8x16xi32>
      %148 = arith.sitofp %147 : vector<8x16xi32> to vector<8x16xf32>
      %c0_99 = arith.constant 0 : index
      %c0_100 = arith.constant 0 : index
      %149 = vector.load %arg13[%c0_99, %c0_100] : memref<8x16xf32, #tpu.memory_space<vmem>>, vector<8x16xf32>
      tpu.vector_store %arg13[%c0_99, %c0_100], %148 {strides = array<i32>} : memref<8x16xf32, #tpu.memory_space<vmem>>, vector<8x16xf32>,
      %150 = arith.index_cast %26 : i32 to index
      %c0_101 = arith.constant 0 : index
      %c0_102 = arith.constant 0 : index
      %151 = vector.load %arg10[%150, %c0_101, %c0_102] : memref<12x8x1xi32, #tpu.memory_space<vmem>>, vector<1x8x1xi32>
      %152 = vector.shape_cast %151 : vector<1x8x1xi32> to vector<8x1xi32>
      %153 = vector.shape_cast %144 : vector<8x1xi32> to vector<1x8x1xi32>
      tpu.vector_store %arg10[%150, %c0_101, %c0_102], %153 {strides = array<i32>} : memref<12x8x1xi32, #tpu.memory_space<vmem>>, vector<1x8x1xi32>,
      %154 = arith.index_cast %26 : i32 to index
      %c0_103 = arith.constant 0 : index
      %c0_104 = arith.constant 0 : index
      %155 = vector.load %arg1[%154, %c0_103, %c0_104] : memref<12x8x1xi32, #tpu.memory_space<vmem>>, vector<1x8x1xi32>
      %156 = vector.shape_cast %155 : vector<1x8x1xi32> to vector<8x1xi32>
      %157 = vector.broadcast %138 : vector<8x1xf32> to vector<8x16xf32>
      %158 = arith.subf %136, %157 : vector<8x16xf32>
      %159 = math.exp %158 : vector<8x16xf32>
      %cst_105 = arith.constant dense<0.000000e+00> : vector<8xf32>
      %160 = vector.multi_reduction <add>, %159, %cst_105 [1] : vector<8x16xf32> to vector<8xf32>
      %161 = vector.shape_cast %160 : vector<8xf32> to vector<8x1xf32>
      %162 = math.log %161 : vector<8x1xf32>
      %163 = arith.addf %138, %162 : vector<8x1xf32>
      %164 = vector.broadcast %156 : vector<8x1xi32> to vector<8x16xi32>
      %165 = arith.cmpi eq, %0, %164 : vector<8x16xi32>
      %cst_106 = arith.constant 0.000000e+00 : f32
      %166 = vector.broadcast %cst_106 : f32 to vector<8x16xf32>
      %167 = arith.select %165, %136, %166 : vector<8x16xi1>, vector<8x16xf32>
      %cst_107 = arith.constant dense<0.000000e+00> : vector<8xf32>
      %168 = vector.multi_reduction <add>, %167, %cst_107 [1] : vector<8x16xf32> to vector<8xf32>
      %169 = vector.shape_cast %168 : vector<8xf32> to vector<8x1xf32>
      %c0_i32_108 = arith.constant 0 : i32
      %170 = vector.broadcast %c0_i32_108 : i32 to vector<8x1xi32>
      %171 = arith.cmpi ne, %156, %170 : vector<8x1xi32>
      %172 = arith.extui %171 : vector<8x1xi1> to vector<8x1xi32>
      %173 = arith.sitofp %172 : vector<8x1xi32> to vector<8x1xf32>
      %c0_109 = arith.constant 0 : index
      %c0_110 = arith.constant 0 : index
      %174 = vector.load %arg14[%c0_109, %c0_110] : memref<8x1xf32, #tpu.memory_space<vmem>>, vector<8x1xf32>
      %175 = arith.subf %163, %169 : vector<8x1xf32>
      %176 = arith.mulf %173, %175 : vector<8x1xf32>
      %177 = arith.addf %174, %176 : vector<8x1xf32>
      %c0_111 = arith.constant 0 : index
      %c0_112 = arith.constant 0 : index
      %178 = vector.load %arg14[%c0_111, %c0_112] : memref<8x1xf32, #tpu.memory_space<vmem>>, vector<8x1xf32>
      tpu.vector_store %arg14[%c0_111, %c0_112], %177 {strides = array<i32>} : memref<8x1xf32, #tpu.memory_space<vmem>>, vector<8x1xf32>,
    }
    %c12_i32_22 = arith.constant 12 : i32
    %c0_23 = arith.constant 0 : index
    %c0_24 = arith.constant 0 : index
    %21 = vector.load %arg14[%c0_23, %c0_24] : memref<8x1xf32, #tpu.memory_space<vmem>>, vector<8x1xf32>
    %cst_25 = arith.constant dense<0.000000e+00> : vector<1xf32>
    %22 = vector.multi_reduction <add>, %21, %cst_25 [0] : vector<8x1xf32> to vector<1xf32>
    %23 = vector.shape_cast %22 : vector<1xf32> to vector<1x1xf32>
    %c0_26 = arith.constant 0 : index
    %c0_27 = arith.constant 0 : index
    %24 = vector.load %arg9[%c0_26, %c0_27] : memref<1x1xf32, #tpu.memory_space<vmem>>, vector<1x1xf32>
    tpu.vector_store %arg9[%c0_26, %c0_27], %23 {strides = array<i32>} : memref<1x1xf32, #tpu.memory_space<vmem>>, vector<1x1xf32>,
    return
  }
}

</mosaic_0001>

<bundles_post_ra>
// kernel: tpu_custom_call.1
= control target key start
LH: loop header
LB: loop body
LE: loop exit
PB: predicated region body
PF: predicated region fallthrough
CT: control target
= control target key end

     0   :  { %16 = vsyncpa [#allocation8], 0  ;;  %s2488_s0 = inlined_call_operand.vmem [shape: f32[96,32], index: 0, kind: input, shape index: {}]   ;;  %s2489_s1 = inlined_call_operand.vmem [shape: s32[12,8,1], index: 1, kind: input, shape index: {}]   ;;  %s2490_s2 = inlined_call_operand.vmem [shape: f32[32,512], index: 2, kind: input, shape index: {}]   ;;  %s2491_s3 = inlined_call_operand.vmem [shape: f32[16,512], index: 3, kind: input, shape index: {}]   ;;  %s2492_s4 = inlined_call_operand.hbm [shape: f32[1,128,512], index: 4, kind: input, shape index: {}]   ;;  %s2493_s5 = inlined_call_operand.hbm [shape: f32[2,128,512], index: 5, kind: input, shape index: {}]   ;;  %s2494_s6 = inlined_call_operand.vmem [shape: f32[2,1,512], index: 6, kind: input, shape index: {}]   ;;  %s2495_s7 = inlined_call_operand.vmem [shape: f32[128,16], index: 7, kind: input, shape index: {}]   ;;  %s2496_s8 = inlined_call_operand.vmem [shape: f32[1,16], index: 8, kind: input, shape index: {}]   ;;  %s2497_s9 = inlined_call_operand.hbm [shape: f32[1,1], index: 9, kind: output, shape index: {0}]   ;;  %s2498_s10 = inlined_call_operand.vmem [shape: s32[12,8,1], index: 10, kind: output, shape index: {1}]  }
   0x1   :  { %17 = vsyncpa [#allocation11], 0 }
   0x2   :  { %18 = vsyncpa [#allocation9], 0  ;;  %s2029_s13 = smov [#allocation7]   ;;  %s1949_s17 = scalar_lea.hbm %s2492_s4, 8192 }
   0x3   :  { %s32_s14 = sshll.u32 %s2029_s13, 4  ;;  %p1950_p0 = scmp.ne.s32.totalorder %s2492_s4, %s1949_s17  ;;  %s33_s14 = int_to_ptr.vmem [resolvable:$true] %s32_s14 }
   0x4   :  { %p1953_p1 = scmp.lt.u32.totalorder %s1949_s17, %s2492_s4 }
   0x6   :  { %p1955_p2 = pnand %p1953_p1, %p1950_p0 }
   0x8   :  { %1958 = shalt.err (!%p1955_p2)
}
   0x9   :  { %s1959_s22 = scalar_lea.vmem %s33_s14, 8192  ;;  %p1964_p4 = scmp.lt.s32.totalorder %s33_s14, %s33_s14 }
   0xa   :  { %p1960_p3 = scmp.ne.s32.totalorder %s33_s14, %s1959_s22  ;;  %p1965_p5 = scmp.lt.s32.totalorder %s1959_s22, %s1959_s22 }
   0xc   :  { %p1966_p6 = por %p1965_p5, %p1964_p4 }
   0xe   :  { %p1967_p7 = pnand %p1966_p6, %p1960_p3 }
  0x10   :  { %1970 = shalt.err (!%p1967_p7)
}
  0x11   :  { %s2030_s23 = smov 512   ;;  %s2031_s24 = smov 32  }
  0x12   :  { %38 = dma.hbm_to_vmem [thread:$0]  %s2492_s4, 8192, %s33_s14, [#allocation8], %s2030_s23, %s2030_s23, %s2031_s24  }
  0x13   :  { %s2032_s27 = smov [#allocation10]   ;;  %s1971_s11 = scalar_lea.hbm %s2493_s5, 16384 }
  0x14   :  { %s44_s28 = sshll.u32 %s2032_s27, 4  ;;  %p1972_p8 = scmp.ne.s32.totalorder %s2493_s5, %s1971_s11  ;;  %s45_s28 = int_to_ptr.vmem [resolvable:$true] %s44_s28 }
  0x15   :  { %p1975_p9 = scmp.lt.u32.totalorder %s1971_s11, %s2493_s5 }
  0x17   :  { %p1977_p10 = pnand %p1975_p9, %p1972_p8 }
  0x19   :  { %1980 = shalt.err (!%p1977_p10)
}
  0x1a   :  { %s1981_s17 = scalar_lea.vmem %s45_s28, 16384  ;;  %p1986_p12 = scmp.lt.s32.totalorder %s45_s28, %s45_s28 }
  0x1b   :  { %p1982_p11 = scmp.ne.s32.totalorder %s45_s28, %s1981_s17  ;;  %p1987_p13 = scmp.lt.s32.totalorder %s1981_s17, %s1981_s17 }
  0x1d   :  { %p1988_p0 = por %p1987_p13, %p1986_p12 }
  0x1f   :  { %p1989_p1 = pnand %p1988_p0, %p1982_p11 }
  0x21   :  { %1992 = shalt.err (!%p1989_p1)
}
  0x22   :  { %50 = dma.hbm_to_vmem [thread:$0]  %s2493_s5, 16384, %s45_s28, [#allocation11], %s2030_s23, %s2030_s23, %s2031_s24  }
  0x23   :  { %2019 = dma.done.wait [#allocation8], 8192  }
  0x24   :  { %2020 = vsyncadd [#allocation8], 4294959104 }
  0x25   :  { %2021 = dma.done.wait [#allocation11], 16384  }
  0x26   :  { %2022 = vsyncadd [#allocation11], 4294950912  ;;  %vm483_vm0 = vcmask 7168   ;;  %v2033_v0 = vmov 0.0   ;;  %v78_v1 = vld [vmem:[%s2490_s2 + $0x8] sm:$0xff]  ;;  %v80_v3 = vld [vmem:[%s2490_s2 + $0x18] sm:$0xff]  ;;  %v63_v37 = vlaneseq }
  0x27   :  { %216 = vmatprep.mubr.f32.mxu0 %v2033_v0  ;;  %474 = vst [vmem:[#allocation2] sm:$0xff] %v2033_v0  ;;  %475 = vst [vmem:[#allocation2 + $0x8] sm:$0xff] %v2033_v0  ;;  %353 = vmatprep.mubr.f32.mxu1 %v2033_v0  ;;  %v82_v2 = vld [vmem:[%s2490_s2 + $0x28] sm:$0xff]  ;;  %v84_v5 = vld [vmem:[%s2490_s2 + $0x38] sm:$0xff]  ;;  %vm115_vm1 = vcmask 261120   ;;  %vm481_vm2 = vcmask 130048  }
  0x28   :  { %476 = vst [vmem:[#allocation3] sm:$0xff] %v2033_v0  ;;  %477 = vst [vmem:[#allocation3 + $0x8] sm:$0xff] %v2033_v0  ;;  %v1641_v4 = vpack.c.bf16 %v82_v2, %v78_v1  ;;  %v77_v6 = vld [vmem:[%s2490_s2] sm:$0xff]  ;;  %v1649_v8 = vpack.c.bf16 %v84_v5, %v80_v3  ;;  %v79_v10 = vld [vmem:[%s2490_s2 + $0x10] sm:$0xff]  ;;  %v2256_v38 = vand.u32 127, %v63_v37  ;;  %v2261_v40 = vshrl.u32 %v63_v37, 7 }
  0x29   :  { %484 = vst.msk [vmem:[#allocation5] sm:$0xff] %vm483_vm0, %v2033_v0  ;;  %v81_v7 = vld [vmem:[%s2490_s2 + $0x20] sm:$0xff]  ;;  %v83_v11 = vld [vmem:[%s2490_s2 + $0x30] sm:$0xff]  ;;  %v86_v12 = vld [vmem:[%s2490_s2 + $0x48] sm:$0xff]  ;;  %s2334_s29 = smov 0  }
  0x2a   :  { %v1643_v9 = vpack.c.bf16 %v81_v7, %v77_v6  ;;  %1642 = vmatprep.subr.bf16.mxu0 %v1641_v4  ;;  %v1651_v13 = vpack.c.bf16 %v83_v11, %v79_v10  ;;  %v90_v14 = vld [vmem:[%s2490_s2 + $0x68] sm:$0xff]  ;;  %v88_v15 = vld [vmem:[%s2490_s2 + $0x58] sm:$0xff]  ;;  %1650 = vmatprep.subr.bf16.mxu1 %v1649_v8  ;;  %v85_v19 = vld [vmem:[%s2490_s2 + $0x40] sm:$0xff]  ;;  %vm478_vm3 = vcmp.eq.s32.totalorder %v2256_v38, 0  ;;  %v97_v41 = vsub.s32 0, %v2261_v40 }
  0x2b   :  { %v92_v16 = vld [vmem:[%s2490_s2 + $0x78] sm:$0xff]  ;;  %v1645_v17 = vpack.c.bf16 %v90_v14, %v86_v12  ;;  %v89_v20 = vld [vmem:[%s2490_s2 + $0x60] sm:$0xff]  ;;  %v87_v21 = vld [vmem:[%s2490_s2 + $0x50] sm:$0xff]  ;;  %v1578_v39 = vsel %vm478_vm3, 1.0, %v2033_v0  ;;  %v105_v43 = vsub.s32 2, %v2261_v40  ;;  %v101_v44 = vsub.s32 1, %v2261_v40 }
  0x2c   :  { %1644 = vmatpush1.bf16.msra.mxu0 %v1643_v9  ;;  %v1653_v18 = vpack.c.bf16 %v92_v16, %v88_v15  ;;  %1652 = vmatpush1.bf16.msra.mxu1 %v1651_v13  ;;  %v1647_v22 = vpack.c.bf16 %v89_v20, %v85_v19  ;;  %v91_v23 = vld [vmem:[%s2490_s2 + $0x70] sm:$0xff]  ;;  %v65_v25 = vld [vmem:[%s2488_s0] sm:$0xff]  ;;  %v66_v26 = vld [vmem:[%s2488_s0 + $0x8] sm:$0xff]  ;;  %482 = vst.msk [vmem:[#allocation4] sm:$0xff] %vm481_vm2, %v1578_v39  ;;  %v109_v45 = vsub.s32 3, %v2261_v40 }
  0x2d   :  { %1646 = vmatprep.subr.bf16.mxu0 %v1645_v17  ;;  %v1655_v24 = vpack.c.bf16 %v91_v23, %v87_v21  ;;  %v67_v27 = vld [vmem:[%s2488_s0 + $0x10] sm:$0xff]  ;;  %v68_v28 = vld [vmem:[%s2488_s0 + $0x18] sm:$0xff]  ;;  %v69_v29 = vld [vmem:[%s2488_s0 + $0x20] sm:$0xff] }
  0x2e   :  { %1654 = vmatprep.subr.bf16.mxu1 %v1653_v18  ;;  %v70_v30 = vld [vmem:[%s2488_s0 + $0x28] sm:$0xff]  ;;  %v71_v31 = vld [vmem:[%s2488_s0 + $0x30] sm:$0xff]  ;;  %v72_v32 = vld [vmem:[%s2488_s0 + $0x38] sm:$0xff] }
  0x2f   :  { %v73_v33 = vld [vmem:[%s2488_s0 + $0x40] sm:$0xff]  ;;  %v74_v34 = vld [vmem:[%s2488_s0 + $0x48] sm:$0xff]  ;;  %v75_v35 = vld [vmem:[%s2488_s0 + $0x50] sm:$0xff] }
  0x30   :  { %1648 = vmatpush1.bf16.msra.mxu0 %v1647_v22  ;;  %1656 = vmatpush1.bf16.msra.mxu1 %v1655_v24  ;;  %v76_v36 = vld [vmem:[%s2488_s0 + $0x58] sm:$0xff]  ;;  %v93_v42 = vld [vmem:[%s2494_s6] sm:$0xf] }
  0x31   :  { %v2272_v46 = vrot.slane %v93_v42, %v97_v41  ;;  %v2276_v47 = vrot.slane %v93_v42, %v105_v43  ;;  %v2280_v48 = vrot.slane %v93_v42, %v101_v44  ;;  %v2284_v49 = vrot.slane %v93_v42, %v109_v45 }
  0x33   :  { %1554 = vmatmul.mubr.msk.f32.vlgmr.msra.gmra.mrb[0].mxu0 %vm115_vm1, %v65_v25  ;;  %1566 = vmatmul.mubr.msk.f32.vlgmr.msra.gmra.mrb[0].mxu1 %vm115_vm1, %v65_v25 }
  0x34   :  { %222 = vmatprep.mubr.f32.mxu0 %v2033_v0  ;;  %359 = vmatprep.mubr.f32.mxu1 %v2033_v0 }
  0x37   :  { %1555 = vmatmul.mubr.msk.f32.gmra.mrb[2].mxu0 %vm115_vm1, %v66_v26  ;;  %1567 = vmatmul.mubr.msk.f32.gmra.mrb[2].mxu1 %vm115_vm1, %v66_v26 }
  0x38   :  { %228 = vmatprep.mubr.f32.mxu0 %v2033_v0  ;;  %365 = vmatprep.mubr.f32.mxu1 %v2033_v0 }
  0x3b   :  { %1556 = vmatmul.mubr.msk.f32.gmra.mrb[4].mxu0 %vm115_vm1, %v67_v27  ;;  %1568 = vmatmul.mubr.msk.f32.gmra.mrb[4].mxu1 %vm115_vm1, %v67_v27 }
  0x3c   :  { %234 = vmatprep.mubr.f32.mxu0 %v2033_v0  ;;  %371 = vmatprep.mubr.f32.mxu1 %v2033_v0 }
  0x3f   :  { %1557 = vmatmul.mubr.msk.f32.gmra.mrb[6].mxu0 %vm115_vm1, %v68_v28  ;;  %1569 = vmatmul.mubr.msk.f32.gmra.mrb[6].mxu1 %vm115_vm1, %v68_v28 }
  0x40   :  { %240 = vmatprep.mubr.f32.mxu0 %v2033_v0  ;;  %377 = vmatprep.mubr.f32.mxu1 %v2033_v0 }
  0x43   :  { %1558 = vmatmul.mubr.msk.f32.gmra.mrb[8].mxu0 %vm115_vm1, %v69_v29  ;;  %1570 = vmatmul.mubr.msk.f32.gmra.mrb[8].mxu1 %vm115_vm1, %v69_v29 }
  0x44   :  { %246 = vmatprep.mubr.f32.mxu0 %v2033_v0  ;;  %383 = vmatprep.mubr.f32.mxu1 %v2033_v0 }
  0x47   :  { %1559 = vmatmul.mubr.msk.f32.gmra.mrb[10].mxu0 %vm115_vm1, %v70_v30  ;;  %1571 = vmatmul.mubr.msk.f32.gmra.mrb[10].mxu1 %vm115_vm1, %v70_v30 }
  0x48   :  { %252 = vmatprep.mubr.f32.mxu0 %v2033_v0  ;;  %389 = vmatprep.mubr.f32.mxu1 %v2033_v0 }
  0x4b   :  { %1560 = vmatmul.mubr.msk.f32.gmra.mrb[12].mxu0 %vm115_vm1, %v71_v31  ;;  %1572 = vmatmul.mubr.msk.f32.gmra.mrb[12].mxu1 %vm115_vm1, %v71_v31 }
  0x4c   :  { %258 = vmatprep.mubr.f32.mxu0 %v2033_v0  ;;  %395 = vmatprep.mubr.f32.mxu1 %v2033_v0 }
  0x4f   :  { %1561 = vmatmul.mubr.msk.f32.gmra.mrb[14].mxu0 %vm115_vm1, %v72_v32  ;;  %1573 = vmatmul.mubr.msk.f32.gmra.mrb[14].mxu1 %vm115_vm1, %v72_v32 }
  0x50   :  { %264 = vmatprep.mubr.f32.mxu0 %v2033_v0  ;;  %401 = vmatprep.mubr.f32.mxu1 %v2033_v0 }
  0x53   :  { %1562 = vmatmul.mubr.msk.f32.gmra.mrb[16].mxu0 %vm115_vm1, %v73_v33  ;;  %1574 = vmatmul.mubr.msk.f32.gmra.mrb[16].mxu1 %vm115_vm1, %v73_v33 }
  0x54   :  { %270 = vmatprep.mubr.f32.mxu0 %v2033_v0  ;;  %407 = vmatprep.mubr.f32.mxu1 %v2033_v0 }
  0x57   :  { %1563 = vmatmul.mubr.msk.f32.gmra.mrb[18].mxu0 %vm115_vm1, %v74_v34  ;;  %1575 = vmatmul.mubr.msk.f32.gmra.mrb[18].mxu1 %vm115_vm1, %v74_v34 }
  0x58   :  { %276 = vmatprep.mubr.f32.mxu0 %v2033_v0  ;;  %413 = vmatprep.mubr.f32.mxu1 %v2033_v0 }
  0x5b   :  { %1564 = vmatmul.mubr.msk.f32.gmra.mrb[20].mxu0 %vm115_vm1, %v75_v35  ;;  %1576 = vmatmul.mubr.msk.f32.gmra.mrb[20].mxu1 %vm115_vm1, %v75_v35 }
  0x5c   :  { %282 = vmatprep.mubr.f32.mxu0 %v2033_v0  ;;  %419 = vmatprep.mubr.f32.mxu1 %v2033_v0 }
  0x5f   :  { %1565 = vmatmul.mubr.msk.f32.gmra.mrb[22].mxu0 %vm115_vm1, %v76_v36  ;;  %1577 = vmatmul.mubr.msk.f32.gmra.mrb[22].mxu1 %vm115_vm1, %v76_v36 }
 0x106   :  { %v218_v50 = vpop.f32.mrb[0].mxu0  ;;  %v355_v52 = vpop.f32.mrb[0].mxu1 }
 0x107   :  { %v219_v51 = vadd.f32 %v218_v50, %v2272_v46  ;;  %v220_v53 = vpop.f32.mrb[1].mxu0  ;;  %v356_v54 = vadd.f32 %v355_v52, %v2276_v47  ;;  %v357_v56 = vpop.f32.mrb[1].mxu1 }
 0x108   :  { %v221_v55 = vadd.f32 %v220_v53, %v2280_v48  ;;  %v358_v57 = vadd.f32 %v357_v56, %v2284_v49 }
 0x109   :  { %426 = vst [vmem:[#allocation6] sm:$0xff] %v219_v51  ;;  %428 = vst [vmem:[#allocation6 + $0x10] sm:$0xff] %v356_v54 }
 0x10a   :  { %427 = vst [vmem:[#allocation6 + $0x8] sm:$0xff] %v221_v55  ;;  %v224_v58 = vpop.f32.mrb[2].mxu0  ;;  %429 = vst [vmem:[#allocation6 + $0x18] sm:$0xff] %v358_v57  ;;  %v361_v60 = vpop.f32.mrb[2].mxu1 }
 0x10b   :  { %v225_v59 = vadd.f32 %v224_v58, %v2272_v46  ;;  %v226_v61 = vpop.f32.mrb[3].mxu0  ;;  %v362_v62 = vadd.f32 %v361_v60, %v2276_v47  ;;  %v363_v0 = vpop.f32.mrb[3].mxu1 }
 0x10c   :  { %v227_v63 = vadd.f32 %v226_v61, %v2280_v48  ;;  %v364_v1 = vadd.f32 %v363_v0, %v2284_v49 }
 0x10d   :  { %430 = vst [vmem:[#allocation6 + $0x20] sm:$0xff] %v225_v59  ;;  %432 = vst [vmem:[#allocation6 + $0x30] sm:$0xff] %v362_v62 }
 0x10e   :  { %431 = vst [vmem:[#allocation6 + $0x28] sm:$0xff] %v227_v63  ;;  %v230_v2 = vpop.f32.mrb[4].mxu0  ;;  %433 = vst [vmem:[#allocation6 + $0x38] sm:$0xff] %v364_v1  ;;  %v367_v4 = vpop.f32.mrb[4].mxu1 }
 0x10f   :  { %v231_v3 = vadd.f32 %v230_v2, %v2272_v46  ;;  %v232_v5 = vpop.f32.mrb[5].mxu0  ;;  %v368_v6 = vadd.f32 %v367_v4, %v2276_v47  ;;  %v369_v8 = vpop.f32.mrb[5].mxu1 }
 0x110   :  { %v233_v7 = vadd.f32 %v232_v5, %v2280_v48  ;;  %v370_v9 = vadd.f32 %v369_v8, %v2284_v49 }
 0x111   :  { %434 = vst [vmem:[#allocation6 + $0x40] sm:$0xff] %v231_v3  ;;  %436 = vst [vmem:[#allocation6 + $0x50] sm:$0xff] %v368_v6 }
 0x112   :  { %435 = vst [vmem:[#allocation6 + $0x48] sm:$0xff] %v233_v7  ;;  %v236_v10 = vpop.f32.mrb[6].mxu0  ;;  %437 = vst [vmem:[#allocation6 + $0x58] sm:$0xff] %v370_v9  ;;  %v373_v12 = vpop.f32.mrb[6].mxu1 }
 0x113   :  { %v237_v11 = vadd.f32 %v236_v10, %v2272_v46  ;;  %v238_v13 = vpop.f32.mrb[7].mxu0  ;;  %v374_v14 = vadd.f32 %v373_v12, %v2276_v47  ;;  %v375_v16 = vpop.f32.mrb[7].mxu1 }
 0x114   :  { %v239_v15 = vadd.f32 %v238_v13, %v2280_v48  ;;  %v376_v17 = vadd.f32 %v375_v16, %v2284_v49 }
 0x115   :  { %438 = vst [vmem:[#allocation6 + $0x60] sm:$0xff] %v237_v11  ;;  %440 = vst [vmem:[#allocation6 + $0x70] sm:$0xff] %v374_v14 }
 0x116   :  { %439 = vst [vmem:[#allocation6 + $0x68] sm:$0xff] %v239_v15  ;;  %v242_v18 = vpop.f32.mrb[8].mxu0  ;;  %441 = vst [vmem:[#allocation6 + $0x78] sm:$0xff] %v376_v17  ;;  %v379_v20 = vpop.f32.mrb[8].mxu1 }
 0x117   :  { %v243_v19 = vadd.f32 %v242_v18, %v2272_v46  ;;  %v244_v21 = vpop.f32.mrb[9].mxu0  ;;  %v380_v22 = vadd.f32 %v379_v20, %v2276_v47  ;;  %v381_v24 = vpop.f32.mrb[9].mxu1 }
 0x118   :  { %v245_v23 = vadd.f32 %v244_v21, %v2280_v48  ;;  %v382_v25 = vadd.f32 %v381_v24, %v2284_v49 }
 0x119   :  { %442 = vst [vmem:[#allocation6 + $0x80] sm:$0xff] %v243_v19  ;;  %444 = vst [vmem:[#allocation6 + $0x90] sm:$0xff] %v380_v22 }
 0x11a   :  { %443 = vst [vmem:[#allocation6 + $0x88] sm:$0xff] %v245_v23  ;;  %v248_v26 = vpop.f32.mrb[10].mxu0  ;;  %445 = vst [vmem:[#allocation6 + $0x98] sm:$0xff] %v382_v25  ;;  %v385_v28 = vpop.f32.mrb[10].mxu1 }
 0x11b   :  { %v249_v27 = vadd.f32 %v248_v26, %v2272_v46  ;;  %v250_v29 = vpop.f32.mrb[11].mxu0  ;;  %v386_v30 = vadd.f32 %v385_v28, %v2276_v47  ;;  %v387_v32 = vpop.f32.mrb[11].mxu1 }
 0x11c   :  { %v251_v31 = vadd.f32 %v250_v29, %v2280_v48  ;;  %v388_v33 = vadd.f32 %v387_v32, %v2284_v49 }
 0x11d   :  { %446 = vst [vmem:[#allocation6 + $0xa0] sm:$0xff] %v249_v27  ;;  %448 = vst [vmem:[#allocation6 + $0xb0] sm:$0xff] %v386_v30 }
 0x11e   :  { %447 = vst [vmem:[#allocation6 + $0xa8] sm:$0xff] %v251_v31  ;;  %v254_v34 = vpop.f32.mrb[12].mxu0  ;;  %449 = vst [vmem:[#allocation6 + $0xb8] sm:$0xff] %v388_v33  ;;  %v391_v36 = vpop.f32.mrb[12].mxu1 }
 0x11f   :  { %v255_v35 = vadd.f32 %v254_v34, %v2272_v46  ;;  %v256_v37 = vpop.f32.mrb[13].mxu0  ;;  %v392_v39 = vadd.f32 %v391_v36, %v2276_v47  ;;  %v393_v50 = vpop.f32.mrb[13].mxu1 }
 0x120   :  { %v257_v42 = vadd.f32 %v256_v37, %v2280_v48  ;;  %v394_v51 = vadd.f32 %v393_v50, %v2284_v49 }
 0x121   :  { %450 = vst [vmem:[#allocation6 + $0xc0] sm:$0xff] %v255_v35  ;;  %452 = vst [vmem:[#allocation6 + $0xd0] sm:$0xff] %v392_v39 }
 0x122   :  { %451 = vst [vmem:[#allocation6 + $0xc8] sm:$0xff] %v257_v42  ;;  %v260_v52 = vpop.f32.mrb[14].mxu0  ;;  %453 = vst [vmem:[#allocation6 + $0xd8] sm:$0xff] %v394_v51  ;;  %v397_v54 = vpop.f32.mrb[14].mxu1 }
 0x123   :  { %v261_v53 = vadd.f32 %v260_v52, %v2272_v46  ;;  %v262_v55 = vpop.f32.mrb[15].mxu0  ;;  %v398_v56 = vadd.f32 %v397_v54, %v2276_v47  ;;  %v399_v58 = vpop.f32.mrb[15].mxu1 }
 0x124   :  { %v263_v57 = vadd.f32 %v262_v55, %v2280_v48  ;;  %v400_v59 = vadd.f32 %v399_v58, %v2284_v49 }
 0x125   :  { %454 = vst [vmem:[#allocation6 + $0xe0] sm:$0xff] %v261_v53  ;;  %456 = vst [vmem:[#allocation6 + $0xf0] sm:$0xff] %v398_v56 }
 0x126   :  { %455 = vst [vmem:[#allocation6 + $0xe8] sm:$0xff] %v263_v57  ;;  %v266_v60 = vpop.f32.mrb[16].mxu0  ;;  %457 = vst [vmem:[#allocation6 + $0xf8] sm:$0xff] %v400_v59  ;;  %v403_v62 = vpop.f32.mrb[16].mxu1 }
 0x127   :  { %v267_v61 = vadd.f32 %v266_v60, %v2272_v46  ;;  %v268_v63 = vpop.f32.mrb[17].mxu0  ;;  %v404_v0 = vadd.f32 %v403_v62, %v2276_v47  ;;  %v405_v2 = vpop.f32.mrb[17].mxu1 }
 0x128   :  { %v269_v1 = vadd.f32 %v268_v63, %v2280_v48  ;;  %v406_v3 = vadd.f32 %v405_v2, %v2284_v49 }
 0x129   :  { %458 = vst [vmem:[#allocation6 + $0x100] sm:$0xff] %v267_v61  ;;  %460 = vst [vmem:[#allocation6 + $0x110] sm:$0xff] %v404_v0 }
 0x12a   :  { %459 = vst [vmem:[#allocation6 + $0x108] sm:$0xff] %v269_v1  ;;  %v272_v4 = vpop.f32.mrb[18].mxu0  ;;  %461 = vst [vmem:[#allocation6 + $0x118] sm:$0xff] %v406_v3  ;;  %v409_v6 = vpop.f32.mrb[18].mxu1 }
 0x12b   :  { %v273_v5 = vadd.f32 %v272_v4, %v2272_v46  ;;  %v274_v7 = vpop.f32.mrb[19].mxu0  ;;  %v410_v8 = vadd.f32 %v409_v6, %v2276_v47  ;;  %v411_v10 = vpop.f32.mrb[19].mxu1 }
 0x12c   :  { %v275_v9 = vadd.f32 %v274_v7, %v2280_v48  ;;  %v412_v11 = vadd.f32 %v411_v10, %v2284_v49 }
 0x12d   :  { %462 = vst [vmem:[#allocation6 + $0x120] sm:$0xff] %v273_v5  ;;  %464 = vst [vmem:[#allocation6 + $0x130] sm:$0xff] %v410_v8 }
 0x12e   :  { %463 = vst [vmem:[#allocation6 + $0x128] sm:$0xff] %v275_v9  ;;  %v278_v12 = vpop.f32.mrb[20].mxu0  ;;  %465 = vst [vmem:[#allocation6 + $0x138] sm:$0xff] %v412_v11  ;;  %v415_v14 = vpop.f32.mrb[20].mxu1 }
 0x12f   :  { %v279_v13 = vadd.f32 %v278_v12, %v2272_v46  ;;  %v280_v15 = vpop.f32.mrb[21].mxu0  ;;  %v416_v16 = vadd.f32 %v415_v14, %v2276_v47  ;;  %v417_v18 = vpop.f32.mrb[21].mxu1 }
 0x130   :  { %v281_v17 = vadd.f32 %v280_v15, %v2280_v48  ;;  %v418_v19 = vadd.f32 %v417_v18, %v2284_v49 }
 0x131   :  { %466 = vst [vmem:[#allocation6 + $0x140] sm:$0xff] %v279_v13  ;;  %468 = vst [vmem:[#allocation6 + $0x150] sm:$0xff] %v416_v16 }
 0x132   :  { %467 = vst [vmem:[#allocation6 + $0x148] sm:$0xff] %v281_v17  ;;  %v284_v20 = vpop.f32.mrb[22].mxu0  ;;  %469 = vst [vmem:[#allocation6 + $0x158] sm:$0xff] %v418_v19  ;;  %v421_v22 = vpop.f32.mrb[22].mxu1 }
 0x133   :  { %v285_v21 = vadd.f32 %v284_v20, %v2272_v46  ;;  %v286_v23 = vpop.f32.mrb[23].mxu0  ;;  %v422_v24 = vadd.f32 %v421_v22, %v2276_v47  ;;  %v423_v26 = vpop.f32.mrb[23].mxu1 }
 0x134   :  { %v287_v25 = vadd.f32 %v286_v23, %v2280_v48  ;;  %v424_v27 = vadd.f32 %v423_v26, %v2284_v49 }
 0x135   :  { %470 = vst [vmem:[#allocation6 + $0x160] sm:$0xff] %v285_v21  ;;  %472 = vst [vmem:[#allocation6 + $0x170] sm:$0xff] %v422_v24 }
 0x136   :  { %471 = vst [vmem:[#allocation6 + $0x168] sm:$0xff] %v287_v25  ;;  %473 = vst [vmem:[#allocation6 + $0x178] sm:$0xff] %v424_v27 }
 0x137 LB: > { %v497_v46 = vld [vmem:[#allocation10 + $0x18] sm:$0xff]  ;;  %v496_v29 = vld [vmem:[#allocation10 + $0x10] sm:$0xff]  ;;  %v2034_v32 = vmov 0.0   ;;  %v495_v62 = vld [vmem:[#allocation10 + $0x8] sm:$0xff]  ;;  %s2382_s23 = sshll.u32 %s2027_s29, 3  ;;  %vm2036_vm4 = vmmov 0   ;;  %s2027_s29 = sphi %s2334_s29, %s490_s29  }
 0x138   : > { %v501_v28 = vld [vmem:[#allocation10 + $0x38] sm:$0xff]  ;;  %v500_v30 = vld [vmem:[#allocation10 + $0x30] sm:$0xff]  ;;  %693 = vmatprep.mubr.f32.mxu1 %v2034_v32  ;;  %622 = vmatprep.mubr.f32.mxu0 %v2034_v32  ;;  %v499_v63 = vld [vmem:[#allocation10 + $0x28] sm:$0xff]  ;;  %s909_s24 = sshra.s32 %s2382_s23, 3  ;;  %s1486_s14 = scalar_lea.vmem %s2489_s1, %s2382_s23 }
 0x139   : > { %v1689_v47 = vpack.c.bf16 %v501_v28, %v497_v46  ;;  %v505_v48 = vld [vmem:[#allocation10 + $0x58] sm:$0xff]  ;;  %v1691_v49 = vpack.c.bf16 %v500_v30, %v496_v29  ;;  %v504_v34 = vld [vmem:[#allocation10 + $0x50] sm:$0xff]  ;;  %v1657_v2 = vpack.c.bf16 %v499_v63, %v495_v62  ;;  %v494_v3 = vld [vmem:[#allocation10] sm:$0xff]  ;;  %s1588_s25 = sshll.u32 %s909_s24, 5  ;;  %s1484_s24 = scalar_lea.vmem %s2498_s10, %s2382_s23 }
 0x13a   : > { %v509_v31 = vld [vmem:[#allocation10 + $0x78] sm:$0xff]  ;;  %v508_v35 = vld [vmem:[#allocation10 + $0x70] sm:$0xff]  ;;  %v498_v4 = vld [vmem:[#allocation10 + $0x20] sm:$0xff]  ;;  %s913_s26 = scalar_lea.vmem [#allocation6], %s1588_s25  ;;  %s490_s29 = sadd.s32 1, %s2027_s29  }
 0x13b   : > { %v1693_v33 = vpack.c.bf16 %v509_v31, %v505_v48  ;;  %v513_v36 = vld [vmem:[#allocation10 + $0x98] sm:$0xff]  ;;  %1690 = vmatprep.subr.bf16.mxu1 %v1689_v47  ;;  %v1695_v39 = vpack.c.bf16 %v508_v35, %v504_v34  ;;  %v512_v50 = vld [vmem:[#allocation10 + $0x90] sm:$0xff]  ;;  %v1659_v7 = vpack.c.bf16 %v498_v4, %v494_v3  ;;  %1658 = vmatprep.subr.bf16.mxu0 %v1657_v2  ;;  %v503_v8 = vld [vmem:[#allocation10 + $0x48] sm:$0xff]  ;;  %p487_p2 = scmp.ge.s32.totalorder %s490_s29, 12  }
 0x13c   : > { %v517_v37 = vld [vmem:[#allocation10 + $0xb8] sm:$0xff]  ;;  %1692 = vmatpush1.bf16.msra.mxu1 %v1691_v49  ;;  %v516_v51 = vld [vmem:[#allocation10 + $0xb0] sm:$0xff]  ;;  %v507_v9 = vld [vmem:[#allocation10 + $0x68] sm:$0xff]  ;;  %s2038_s23 = smov (%p487_p2), [#allocation12]   ;;  %vm1521_vm10 = vcmask (%p487_p2), 0  }
 0x13d   : > { %1694 = vmatprep.subr.bf16.mxu1 %v1693_v33  ;;  %v1697_v42 = vpack.c.bf16 %v517_v37, %v513_v36  ;;  %v521_v52 = vld [vmem:[#allocation10 + $0xd8] sm:$0xff]  ;;  %v1699_v54 = vpack.c.bf16 %v516_v51, %v512_v50  ;;  %v520_v56 = vld [vmem:[#allocation10 + $0xd0] sm:$0xff]  ;;  %v502_v10 = vld [vmem:[#allocation10 + $0x40] sm:$0xff]  ;;  %1660 = vmatpush1.bf16.msra.mxu0 %v1659_v7  ;;  %v1661_v14 = vpack.c.bf16 %v507_v9, %v503_v8  ;;  %s1529_s25 = sshll.u32 (%p487_p2), %s2038_s23, 4  ;;  %s1530_s25 = int_to_ptr.vmem [resolvable:$true] %s1529_s25 }
 0x13e   : > { %v525_v53 = vld [vmem:[#allocation10 + $0xf8] sm:$0xff]  ;;  %v524_v57 = vld [vmem:[#allocation10 + $0xf0] sm:$0xff]  ;;  %v506_v15 = vld [vmem:[#allocation10 + $0x60] sm:$0xff]  ;;  %s1997_s27 = scalar_lea.vmem (%p487_p2), %s1530_s25, 32  ;;  %p1998_p4 = scmp.lt.s32.totalorder (%p487_p2), %s1530_s25, %s1530_s25 }
 0x13f   : > { %v1701_v55 = vpack.c.bf16 %v525_v53, %v521_v52  ;;  %v529_v58 = vld [vmem:[#allocation10 + $0x118] sm:$0xff]  ;;  %v1703_v60 = vpack.c.bf16 %v524_v57, %v520_v56  ;;  %v528_v61 = vld [vmem:[#allocation10 + $0x110] sm:$0xff]  ;;  %v1663_v19 = vpack.c.bf16 %v506_v15, %v502_v10  ;;  %v511_v20 = vld [vmem:[#allocation10 + $0x88] sm:$0xff]  ;;  %1662 = vmatprep.subr.bf16.mxu0 %v1661_v14 }
 0x140   : > { %1696 = vmatpush1.bf16.msra.mxu1 %v1695_v39  ;;  %v533_v59 = vld [vmem:[#allocation10 + $0x138] sm:$0xff]  ;;  %v532_v1 = vld [vmem:[#allocation10 + $0x130] sm:$0xff]  ;;  %v515_v21 = vld [vmem:[#allocation10 + $0xa8] sm:$0xff] }
 0x141   : > { %1698 = vmatprep.subr.bf16.mxu1 %v1697_v42  ;;  %v1705_v0 = vpack.c.bf16 %v533_v59, %v529_v58  ;;  %v537_v5 = vld [vmem:[#allocation10 + $0x158] sm:$0xff]  ;;  %v1707_v11 = vpack.c.bf16 %v532_v1, %v528_v61  ;;  %v536_v12 = vld [vmem:[#allocation10 + $0x150] sm:$0xff]  ;;  %v510_v22 = vld [vmem:[#allocation10 + $0x80] sm:$0xff]  ;;  %v1665_v24 = vpack.c.bf16 %v515_v21, %v511_v20  ;;  %1664 = vmatpush1.bf16.msra.mxu0 %v1663_v19 }
 0x142   : > { %v541_v6 = vld [vmem:[#allocation10 + $0x178] sm:$0xff]  ;;  %v540_v13 = vld [vmem:[#allocation10 + $0x170] sm:$0xff]  ;;  %v514_v23 = vld [vmem:[#allocation10 + $0xa0] sm:$0xff] }
 0x143   : > { %v1709_v16 = vpack.c.bf16 %v541_v6, %v537_v5  ;;  %v545_v17 = vld [vmem:[#allocation10 + $0x198] sm:$0xff]  ;;  %v1711_v25 = vpack.c.bf16 %v540_v13, %v536_v12  ;;  %v544_v26 = vld [vmem:[#allocation10 + $0x190] sm:$0xff]  ;;  %v1667_v27 = vpack.c.bf16 %v514_v23, %v510_v22  ;;  %v519_v46 = vld [vmem:[#allocation10 + $0xc8] sm:$0xff]  ;;  %1666 = vmatprep.subr.bf16.mxu0 %v1665_v24 }
 0x144   : > { %1700 = vmatpush1.bf16.msra.mxu1 %v1699_v54  ;;  %v549_v18 = vld [vmem:[#allocation10 + $0x1b8] sm:$0xff]  ;;  %v523_v28 = vld [vmem:[#allocation10 + $0xe8] sm:$0xff]  ;;  %v548_v47 = vld [vmem:[#allocation10 + $0x1b0] sm:$0xff] }
 0x145   : > { %1702 = vmatprep.subr.bf16.mxu1 %v1701_v55  ;;  %v1713_v29 = vpack.c.bf16 %v549_v18, %v545_v17  ;;  %v1669_v30 = vpack.c.bf16 %v523_v28, %v519_v46  ;;  %v518_v48 = vld [vmem:[#allocation10 + $0xc0] sm:$0xff]  ;;  %v553_v49 = vld [vmem:[#allocation10 + $0x1d8] sm:$0xff]  ;;  %v527_v34 = vld [vmem:[#allocation10 + $0x108] sm:$0xff]  ;;  %v1715_v36 = vpack.c.bf16 %v548_v47, %v544_v26  ;;  %1668 = vmatpush1.bf16.msra.mxu0 %v1667_v27 }
 0x146   : > { %v522_v31 = vld [vmem:[#allocation10 + $0xe0] sm:$0xff]  ;;  %v557_v33 = vld [vmem:[#allocation10 + $0x1f8] sm:$0xff]  ;;  %v531_v35 = vld [vmem:[#allocation10 + $0x128] sm:$0xff] }
 0x147   : > { %v552_v37 = vld [vmem:[#allocation10 + $0x1d0] sm:$0xff]  ;;  %v1671_v42 = vpack.c.bf16 %v522_v31, %v518_v48  ;;  %v1717_v50 = vpack.c.bf16 %v557_v33, %v553_v49  ;;  %v706_v51 = vld [vmem:[#allocation10 + $0x218] sm:$0xff]  ;;  %1670 = vmatprep.subr.bf16.mxu0 %v1669_v30  ;;  %v1673_v52 = vpack.c.bf16 %v531_v35, %v527_v34  ;;  %v526_v53 = vld [vmem:[#allocation10 + $0x100] sm:$0xff] }
 0x148   : > { %1704 = vmatpush1.bf16.msra.mxu1 %v1703_v60  ;;  %v556_v39 = vld [vmem:[#allocation10 + $0x1f0] sm:$0xff]  ;;  %v530_v54 = vld [vmem:[#allocation10 + $0x120] sm:$0xff]  ;;  %v710_v55 = vld [vmem:[#allocation10 + $0x238] sm:$0xff] }
 0x149   : > { %1706 = vmatprep.subr.bf16.mxu1 %v1705_v0  ;;  %v535_v56 = vld [vmem:[#allocation10 + $0x148] sm:$0xff]  ;;  %v1719_v58 = vpack.c.bf16 %v556_v39, %v552_v37  ;;  %v705_v59 = vld [vmem:[#allocation10 + $0x210] sm:$0xff]  ;;  %1672 = vmatpush1.bf16.msra.mxu0 %v1671_v42  ;;  %v1675_v61 = vpack.c.bf16 %v530_v54, %v526_v53  ;;  %v1753_v62 = vpack.c.bf16 %v710_v55, %v706_v51  ;;  %v714_v63 = vld [vmem:[#allocation10 + $0x258] sm:$0xff] }
 0x14a   : > { %v539_v57 = vld [vmem:[#allocation10 + $0x168] sm:$0xff]  ;;  %v709_v60 = vld [vmem:[#allocation10 + $0x230] sm:$0xff]  ;;  %1674 = vmatprep.subr.bf16.mxu0 %v1673_v52  ;;  %v534_v1 = vld [vmem:[#allocation10 + $0x140] sm:$0xff] }
 0x14b   : > { %v1677_v0 = vpack.c.bf16 %v539_v57, %v535_v56  ;;  %v538_v2 = vld [vmem:[#allocation10 + $0x160] sm:$0xff]  ;;  %v718_v3 = vld [vmem:[#allocation10 + $0x278] sm:$0xff]  ;;  %v543_v4 = vld [vmem:[#allocation10 + $0x188] sm:$0xff]  ;;  %v1755_v7 = vpack.c.bf16 %v709_v60, %v705_v59 }
 0x14c   : > { %1708 = vmatpush1.bf16.msra.mxu1 %v1707_v11  ;;  %v547_v5 = vld [vmem:[#allocation10 + $0x1a8] sm:$0xff]  ;;  %v2341_v6 = vld [vmem:[#allocation2] sm:$0xff]  ;;  %v1679_v10 = vpack.c.bf16 %v538_v2, %v534_v1  ;;  %v1757_v11 = vpack.c.bf16 %v718_v3, %v714_v63  ;;  %v722_v12 = vld [vmem:[#allocation10 + $0x298] sm:$0xff] }
 0x14d   : > { %1710 = vmatprep.subr.bf16.mxu1 %v1709_v16  ;;  %v713_v8 = vld [vmem:[#allocation10 + $0x250] sm:$0xff]  ;;  %1676 = vmatpush1.bf16.msra.mxu0 %v1675_v61  ;;  %v1681_v13 = vpack.c.bf16 %v547_v5, %v543_v4  ;;  %v542_v14 = vld [vmem:[#allocation10 + $0x180] sm:$0xff]  ;;  %v726_v16 = vld [vmem:[#allocation10 + $0x2b8] sm:$0xff] }
 0x14e   : > { %v717_v9 = vld [vmem:[#allocation10 + $0x270] sm:$0xff]  ;;  %1678 = vmatprep.subr.bf16.mxu0 %v1677_v0  ;;  %v546_v15 = vld [vmem:[#allocation10 + $0x1a0] sm:$0xff]  ;;  %v551_v17 = vld [vmem:[#allocation10 + $0x1c8] sm:$0xff]  ;;  %v1761_v23 = vpack.c.bf16 %v726_v16, %v722_v12 }
 0x14f   : > { %v555_v18 = vld [vmem:[#allocation10 + $0x1e8] sm:$0xff]  ;;  %v1759_v19 = vpack.c.bf16 %v717_v9, %v713_v8  ;;  %v721_v20 = vld [vmem:[#allocation10 + $0x290] sm:$0xff]  ;;  %v1683_v22 = vpack.c.bf16 %v546_v15, %v542_v14  ;;  %v730_v24 = vld [vmem:[#allocation10 + $0x2d8] sm:$0xff] }
 0x150   : > { %1712 = vmatpush1.bf16.msra.mxu1 %v1711_v25  ;;  %v725_v21 = vld [vmem:[#allocation10 + $0x2b0] sm:$0xff]  ;;  %v1685_v25 = vpack.c.bf16 %v555_v18, %v551_v17  ;;  %v550_v26 = vld [vmem:[#allocation10 + $0x1c0] sm:$0xff]  ;;  %v734_v46 = vld [vmem:[#allocation10 + $0x2f8] sm:$0xff] }
 0x151   : > { %1714 = vmatprep.subr.bf16.mxu1 %v1713_v29  ;;  %1680 = vmatpush1.bf16.msra.mxu0 %v1679_v10  ;;  %v554_v27 = vld [vmem:[#allocation10 + $0x1e0] sm:$0xff]  ;;  %v704_v28 = vld [vmem:[#allocation10 + $0x208] sm:$0xff]  ;;  %v1763_v47 = vpack.c.bf16 %v725_v21, %v721_v20  ;;  %v729_v30 = vld [vmem:[#allocation10 + $0x2d0] sm:$0xff]  ;;  %v1765_v49 = vpack.c.bf16 %v734_v46, %v730_v24 }
 0x152   : > { %1682 = vmatprep.subr.bf16.mxu0 %v1681_v13  ;;  %v708_v29 = vld [vmem:[#allocation10 + $0x228] sm:$0xff]  ;;  %v733_v48 = vld [vmem:[#allocation10 + $0x2f0] sm:$0xff]  ;;  %v1687_v31 = vpack.c.bf16 %v554_v27, %v550_v26  ;;  %v738_v33 = vld [vmem:[#allocation10 + $0x318] sm:$0xff] }
 0x153   : > { %v1721_v34 = vpack.c.bf16 %v708_v29, %v704_v28  ;;  %v703_v35 = vld [vmem:[#allocation10 + $0x200] sm:$0xff]  ;;  %v742_v37 = vld [vmem:[#allocation10 + $0x338] sm:$0xff]  ;;  %v712_v39 = vld [vmem:[#allocation10 + $0x248] sm:$0xff] }
 0x154   : > { %1716 = vmatpush1.bf16.msra.mxu1 %v1715_v36  ;;  %v707_v36 = vld [vmem:[#allocation10 + $0x220] sm:$0xff]  ;;  %v716_v42 = vld [vmem:[#allocation10 + $0x268] sm:$0xff]  ;;  %v737_v51 = vld [vmem:[#allocation10 + $0x310] sm:$0xff]  ;;  %v1769_v54 = vpack.c.bf16 %v742_v37, %v738_v33 }
 0x155   : > { %1718 = vmatprep.subr.bf16.mxu1 %v1717_v50  ;;  %1684 = vmatpush1.bf16.msra.mxu0 %v1683_v22  ;;  %v1767_v50 = vpack.c.bf16 %v733_v48, %v729_v30  ;;  %v741_v52 = vld [vmem:[#allocation10 + $0x330] sm:$0xff]  ;;  %v1723_v53 = vpack.c.bf16 %v707_v36, %v703_v35  ;;  %v746_v55 = vld [vmem:[#allocation10 + $0x358] sm:$0xff]  ;;  %v1725_v56 = vpack.c.bf16 %v716_v42, %v712_v39  ;;  %v711_v57 = vld [vmem:[#allocation10 + $0x240] sm:$0xff] }
 0x156   : > { %1686 = vmatprep.subr.bf16.mxu0 %v1685_v25  ;;  %v750_v59 = vld [vmem:[#allocation10 + $0x378] sm:$0xff]  ;;  %v720_v60 = vld [vmem:[#allocation10 + $0x288] sm:$0xff]  ;;  %v745_v63 = vld [vmem:[#allocation10 + $0x350] sm:$0xff] }
 0x157   : > { %v724_v61 = vld [vmem:[#allocation10 + $0x2a8] sm:$0xff]  ;;  %v749_v0 = vld [vmem:[#allocation10 + $0x370] sm:$0xff]  ;;  %v1773_v2 = vpack.c.bf16 %v750_v59, %v746_v55  ;;  %v754_v3 = vld [vmem:[#allocation10 + $0x398] sm:$0xff] }
 0x158   : > { %1720 = vmatpush1.bf16.msra.mxu1 %v1719_v58  ;;  %v715_v58 = vld [vmem:[#allocation10 + $0x260] sm:$0xff]  ;;  %v1729_v4 = vpack.c.bf16 %v724_v61, %v720_v60  ;;  %v758_v8 = vld [vmem:[#allocation10 + $0x3b8] sm:$0xff]  ;;  %v728_v9 = vld [vmem:[#allocation10 + $0x2c8] sm:$0xff] }
 0x159   : > { %1754 = vmatprep.subr.bf16.mxu1 %v1753_v62  ;;  %1688 = vmatpush1.bf16.msra.mxu0 %v1687_v31  ;;  %v1771_v62 = vpack.c.bf16 %v741_v52, %v737_v51  ;;  %v1727_v1 = vpack.c.bf16 %v715_v58, %v711_v57  ;;  %v719_v5 = vld [vmem:[#allocation10 + $0x280] sm:$0xff]  ;;  %v732_v10 = vld [vmem:[#allocation10 + $0x2e8] sm:$0xff]  ;;  %v1777_v12 = vpack.c.bf16 %v758_v8, %v754_v3  ;;  %v753_v13 = vld [vmem:[#allocation10 + $0x390] sm:$0xff] }
 0x15a   : > { %1722 = vmatprep.subr.bf16.mxu0 %v1721_v34  ;;  %v757_v14 = vld [vmem:[#allocation10 + $0x3b0] sm:$0xff]  ;;  %v1733_v15 = vpack.c.bf16 %v732_v10, %v728_v9  ;;  %v762_v16 = vld [vmem:[#allocation10 + $0x3d8] sm:$0xff]  ;;  %v921_v46 = vld [vmem:[%s2491_s3 + $0x18] sm:$0xff] }
 0x15b   : > { %694 = vmatmul.mubr.f32.vlgmr.msra.gmra.mrb[0].mxu1 %v2341_v6  ;;  %v766_v17 = vld [vmem:[#allocation10 + $0x3f8] sm:$0xff]  ;;  %v1779_v18 = vpack.c.bf16 %v757_v14, %v753_v13  ;;  %v761_v20 = vld [vmem:[#allocation10 + $0x3d0] sm:$0xff]  ;;  %v925_v28 = vld [vmem:[%s2491_s3 + $0x38] sm:$0xff] }
 0x15c   : > { %1756 = vmatpush1.bf16.msra.mxu1 %v1755_v7  ;;  %902 = vmatprep.mubr.f32.mxu1 %v2034_v32  ;;  %v723_v7 = vld [vmem:[#allocation10 + $0x2a0] sm:$0xff]  ;;  %v765_v21 = vld [vmem:[#allocation10 + $0x3f0] sm:$0xff]  ;;  %v919_v22 = vld [vmem:[%s2491_s3 + $0x8] sm:$0xff]  ;;  %v1789_v30 = vpack.c.bf16 %v925_v28, %v921_v46 }
 0x15d   : > { %1758 = vmatprep.subr.bf16.mxu1 %v1757_v11  ;;  %623 = vmatmul.mubr.f32.vlgmr.msra.gmra.mrb[0].mxu0 %v2341_v6  ;;  %v1775_v6 = vpack.c.bf16 %v749_v0, %v745_v63  ;;  %v1731_v11 = vpack.c.bf16 %v723_v7, %v719_v5  ;;  %v1783_v24 = vpack.c.bf16 %v765_v21, %v761_v20  ;;  %v918_v26 = vld [vmem:[%s2491_s3] sm:$0xff]  ;;  %v2365_v29 = vld [vmem:[#allocation2 + $0x8] sm:$0xff]  ;;  %v920_v48 = vld [vmem:[%s2491_s3 + $0x10] sm:$0xff] }
 0x15e   : > { %1724 = vmatpush1.bf16.msra.mxu0 %v1723_v53  ;;  %831 = vmatprep.mubr.f32.mxu0 %v2034_v32  ;;  %v922_v27 = vld [vmem:[%s2491_s3 + $0x20] sm:$0xff]  ;;  %v924_v31 = vld [vmem:[%s2491_s3 + $0x30] sm:$0xff]  ;;  %v736_v37 = vld [vmem:[#allocation10 + $0x308] sm:$0xff] }
 0x15f   : > { %1726 = vmatprep.subr.bf16.mxu0 %v1725_v56  ;;  %v1791_v33 = vpack.c.bf16 %v924_v31, %v920_v48  ;;  %v727_v34 = vld [vmem:[#allocation10 + $0x2c0] sm:$0xff]  ;;  %v740_v39 = vld [vmem:[#allocation10 + $0x328] sm:$0xff]  ;;  %v1109_v10 = vld [vmem:[#allocation7 + $0x18] sm:$0xff] }
 0x160   : > { %1760 = vmatpush1.bf16.msra.mxu1 %v1759_v19  ;;  %v1781_v19 = vpack.c.bf16 %v766_v17, %v762_v16  ;;  %v731_v35 = vld [vmem:[#allocation10 + $0x2e0] sm:$0xff]  ;;  %v1737_v42 = vpack.c.bf16 %v740_v39, %v736_v37  ;;  %v744_v53 = vld [vmem:[#allocation10 + $0x348] sm:$0xff]  ;;  %v1108_v16 = vld [vmem:[#allocation7 + $0x10] sm:$0xff] }
 0x161   : > { %1762 = vmatprep.subr.bf16.mxu1 %v1761_v23  ;;  %v923_v23 = vld [vmem:[%s2491_s3 + $0x28] sm:$0xff]  ;;  %v1735_v36 = vpack.c.bf16 %v731_v35, %v727_v34  ;;  %v739_v51 = vld [vmem:[#allocation10 + $0x320] sm:$0xff]  ;;  %v752_v59 = vld [vmem:[#allocation10 + $0x388] sm:$0xff] }
 0x162   : > { %1728 = vmatpush1.bf16.msra.mxu0 %v1727_v1  ;;  %v1785_v25 = vpack.c.bf16 %v923_v23, %v919_v22  ;;  %v743_v56 = vld [vmem:[#allocation10 + $0x340] sm:$0xff]  ;;  %v756_v60 = vld [vmem:[#allocation10 + $0x3a8] sm:$0xff]  ;;  %v1112_v17 = vld [vmem:[#allocation7 + $0x30] sm:$0xff] }
 0x163   : > { %1730 = vmatprep.subr.bf16.mxu0 %v1729_v4  ;;  %v747_v57 = vld [vmem:[#allocation10 + $0x360] sm:$0xff]  ;;  %v1745_v61 = vpack.c.bf16 %v756_v60, %v752_v59  ;;  %v760_v1 = vld [vmem:[#allocation10 + $0x3c8] sm:$0xff]  ;;  %v1117_v21 = vld [vmem:[#allocation7 + $0x58] sm:$0xff] }
 0x164   : > { %1764 = vmatpush1.bf16.msra.mxu1 %v1763_v47  ;;  %v1787_v47 = vpack.c.bf16 %v922_v27, %v918_v26  ;;  %v1743_v58 = vpack.c.bf16 %v747_v57, %v743_v56  ;;  %v755_v63 = vld [vmem:[#allocation10 + $0x3a0] sm:$0xff]  ;;  %v1107_v8 = vld [vmem:[#allocation7 + $0x8] sm:$0xff]  ;;  %v1121_v23 = vld [vmem:[#allocation7 + $0x78] sm:$0xff] }
 0x165   : > { %1766 = vmatprep.subr.bf16.mxu1 %v1765_v49  ;;  %v491_v49 = vld [vmem:[#allocation4] sm:$0xff]  ;;  %v759_v4 = vld [vmem:[#allocation10 + $0x3c0] sm:$0xff]  ;;  %v1111_v9 = vld [vmem:[#allocation7 + $0x28] sm:$0xff] }
 0x166   : > { %1732 = vmatpush1.bf16.msra.mxu0 %v1731_v11  ;;  %v763_v5 = vld [vmem:[#allocation10 + $0x3e0] sm:$0xff]  ;;  %v1113_v11 = vld [vmem:[#allocation7 + $0x38] sm:$0xff]  ;;  %v1119_v20 = vld [vmem:[#allocation7 + $0x68] sm:$0xff] }
 0x167   : > { %1734 = vmatprep.subr.bf16.mxu0 %v1733_v15  ;;  %v1751_v7 = vpack.c.bf16 %v763_v5, %v759_v4  ;;  %v1110_v13 = vld [vmem:[#allocation7 + $0x20] sm:$0xff]  ;;  %v1825_v14 = vpack.c.bf16 %v1113_v11, %v1109_v10  ;;  %v1116_v27 = vld [vmem:[#allocation7 + $0x50] sm:$0xff]  ;;  %v1125_v48 = vld [vmem:[#allocation7 + $0x98] sm:$0xff] }
 0x168   : > { %1768 = vmatpush1.bf16.msra.mxu1 %v1767_v50  ;;  %v735_v50 = vld [vmem:[#allocation10 + $0x300] sm:$0xff]  ;;  %v1120_v46 = vld [vmem:[#allocation7 + $0x70] sm:$0xff]  ;;  %v1151_v11 = vld [vmem:[#allocation7 + $0x168] sm:$0xff] }
 0x169   : > { %1770 = vmatprep.subr.bf16.mxu1 %v1769_v54  ;;  %v1739_v52 = vpack.c.bf16 %v739_v51, %v735_v50  ;;  %v748_v54 = vld [vmem:[#allocation10 + $0x368] sm:$0xff]  ;;  %v1118_v26 = vld [vmem:[#allocation7 + $0x60] sm:$0xff]  ;;  %v1124_v37 = vld [vmem:[#allocation7 + $0x90] sm:$0xff] }
 0x16a   : > { %1736 = vmatpush1.bf16.msra.mxu0 %v1735_v36  ;;  %v1741_v55 = vpack.c.bf16 %v748_v54, %v744_v53  ;;  %v1126_v34 = vld [vmem:[#allocation7 + $0xa0] sm:$0xff]  ;;  %v1128_v39 = vld [vmem:[#allocation7 + $0xb0] sm:$0xff]  ;;  %v1131_v50 = vld [vmem:[#allocation7 + $0xc8] sm:$0xff] }
 0x16b   : > { %1738 = vmatprep.subr.bf16.mxu0 %v1737_v42  ;;  %v1835_v42 = vpack.c.bf16 %v1128_v39, %v1124_v37  ;;  %v1135_v51 = vld [vmem:[#allocation7 + $0xe8] sm:$0xff]  ;;  %v1137_v54 = vld [vmem:[#allocation7 + $0xf8] sm:$0xff]  ;;  %v1134_v56 = vld [vmem:[#allocation7 + $0xe0] sm:$0xff] }
 0x16c   : > { %1772 = vmatpush1.bf16.msra.mxu1 %v1771_v62  ;;  %v751_v62 = vld [vmem:[#allocation10 + $0x380] sm:$0xff]  ;;  %v1805_v53 = vpack.c.bf16 %v1135_v51, %v1131_v50  ;;  %v1132_v59 = vld [vmem:[#allocation7 + $0xd0] sm:$0xff] }
 0x16d   : > { %1774 = vmatprep.subr.bf16.mxu1 %v1773_v2  ;;  %v1747_v0 = vpack.c.bf16 %v755_v63, %v751_v62  ;;  %v764_v2 = vld [vmem:[#allocation10 + $0x3e8] sm:$0xff]  ;;  %v1136_v60 = vld [vmem:[#allocation7 + $0xf0] sm:$0xff]  ;;  %v1142_v4 = vld [vmem:[#allocation7 + $0x120] sm:$0xff] }
 0x16e   : > { %1740 = vmatpush1.bf16.msra.mxu0 %v1739_v52  ;;  %v1749_v3 = vpack.c.bf16 %v764_v2, %v760_v1  ;;  %v1133_v52 = vld [vmem:[#allocation7 + $0xd8] sm:$0xff]  ;;  %v1139_v62 = vld [vmem:[#allocation7 + $0x108] sm:$0xff]  ;;  %v1166_v39 = vld [vmem:[#allocation7 + $0x1e0] sm:$0xff] }
 0x16f   : > { %1742 = vmatprep.subr.bf16.mxu0 %v1741_v55  ;;  %v1130_v55 = vld [vmem:[#allocation7 + $0xc0] sm:$0xff]  ;;  %v1837_v57 = vpack.c.bf16 %v1137_v54, %v1133_v52  ;;  %v1143_v63 = vld [vmem:[#allocation7 + $0x128] sm:$0xff]  ;;  %v1145_v2 = vld [vmem:[#allocation7 + $0x138] sm:$0xff] }
 0x170   : > { %1776 = vmatpush1.bf16.msra.mxu1 %v1775_v6  ;;  %v1793_v6 = vpack.c.bf16 %v1111_v9, %v1107_v8  ;;  %v1809_v1 = vpack.c.bf16 %v1143_v63, %v1139_v62  ;;  %v1140_v8 = vld [vmem:[#allocation7 + $0x110] sm:$0xff] }
 0x171   : > { %1778 = vmatprep.subr.bf16.mxu1 %v1777_v12  ;;  %v1106_v12 = vld [vmem:[#allocation7] sm:$0xff]  ;;  %v1144_v9 = vld [vmem:[#allocation7 + $0x130] sm:$0xff] }
 0x172   : > { %1744 = vmatpush1.bf16.msra.mxu0 %v1743_v58  ;;  %v1795_v15 = vpack.c.bf16 %v1110_v13, %v1106_v12  ;;  %v1807_v58 = vpack.c.bf16 %v1134_v56, %v1130_v55  ;;  %v1843_v10 = vpack.c.bf16 %v1144_v9, %v1140_v8  ;;  %v1149_v12 = vld [vmem:[#allocation7 + $0x158] sm:$0xff]  ;;  %v1168_v50 = vld [vmem:[#allocation7 + $0x1f0] sm:$0xff]  ;;  %v916_v9 = vld [vmem:[%s913_s26 + $0x10] sm:$0xff] }
 0x173   : > { %1746 = vmatprep.subr.bf16.mxu0 %v1745_v61  ;;  %v1839_v61 = vpack.c.bf16 %v1136_v60, %v1132_v59  ;;  %v914_v55 = vld [vmem:[%s913_s26] sm:$0xff]  ;;  %v915_v56 = vld [vmem:[%s913_s26 + $0x8] sm:$0xff] }
 0x174   : > { %1780 = vmatpush1.bf16.msra.mxu1 %v1779_v18  ;;  %v1827_v18 = vpack.c.bf16 %v1112_v17, %v1108_v16  ;;  %v1150_v16 = vld [vmem:[#allocation7 + $0x160] sm:$0xff] }
 0x175   : > { %1782 = vmatprep.subr.bf16.mxu1 %v1781_v19  ;;  %v1115_v19 = vld [vmem:[#allocation7 + $0x48] sm:$0xff] }
 0x176   : > { %1748 = vmatpush1.bf16.msra.mxu0 %v1747_v0  ;;  %v1797_v22 = vpack.c.bf16 %v1119_v20, %v1115_v19  ;;  %v1141_v0 = vld [vmem:[#allocation7 + $0x118] sm:$0xff]  ;;  %v1148_v19 = vld [vmem:[#allocation7 + $0x150] sm:$0xff] }
 0x177   : > { %1750 = vmatprep.subr.bf16.mxu0 %v1749_v3  ;;  %v1138_v3 = vld [vmem:[#allocation7 + $0x100] sm:$0xff]  ;;  %v1841_v5 = vpack.c.bf16 %v1145_v2, %v1141_v0  ;;  %v1152_v20 = vld [vmem:[#allocation7 + $0x170] sm:$0xff]  ;;  %v917_v0 = vld [vmem:[%s913_s26 + $0x18] sm:$0xff]  ;;  %s1993_s26 = scalar_lea.vmem (%p487_p2), %s1530_s25, 16 }
 0x178   : > { %1784 = vmatpush1.bf16.msra.mxu1 %v1783_v24  ;;  %v1114_v24 = vld [vmem:[#allocation7 + $0x40] sm:$0xff]  ;;  %p1994_p3 = scmp.ne.s32.totalorder (%p487_p2), %s1530_s25, %s1993_s26  ;;  %p1999_p5 = scmp.lt.s32.totalorder (%p487_p2), %s1997_s27, %s1993_s26 }
 0x179   : > { %1786 = vmatprep.subr.bf16.mxu1 %v1785_v25  ;;  %v1829_v25 = vpack.c.bf16 %v1121_v23, %v1117_v21  ;;  %v1799_v28 = vpack.c.bf16 %v1118_v26, %v1114_v24  ;;  %v1155_v21 = vld [vmem:[#allocation7 + $0x188] sm:$0xff]  ;;  %v1157_v24 = vld [vmem:[#allocation7 + $0x198] sm:$0xff] }
 0x17a   : > { %1752 = vmatpush1.bf16.msra.mxu0 %v1751_v7  ;;  %v1811_v7 = vpack.c.bf16 %v1142_v4, %v1138_v3  ;;  %v1159_v23 = vld [vmem:[#allocation7 + $0x1a8] sm:$0xff]  ;;  %p2000_p6 = por (%p487_p2), %p1999_p5, %p1998_p4 }
 0x17b   : > { %903 = vmatmul.mubr.f32.vlgmr.msra.gmra.mrb[2].mxu1 %v2365_v29  ;;  %1794 = vmatprep.subr.bf16.mxu0 %v1793_v6  ;;  %v1147_v6 = vld [vmem:[#allocation7 + $0x148] sm:$0xff]  ;;  %v1817_v26 = vpack.c.bf16 %v1159_v23, %v1155_v21 }
 0x17c   : > { %1788 = vmatpush1.bf16.msra.mxu1 %v1787_v47  ;;  %993 = vmatprep.mubr.f32.mxu1 %v2034_v32  ;;  %v1831_v47 = vpack.c.bf16 %v1120_v46, %v1116_v27  ;;  %v1813_v13 = vpack.c.bf16 %v1151_v11, %v1147_v6  ;;  %v1154_v46 = vld [vmem:[#allocation7 + $0x180] sm:$0xff]  ;;  %p2001_p7 = pnand (%p487_p2), %p2000_p6, %p1994_p3 }
 0x17d   : > { %1790 = vmatprep.subr.bf16.mxu1 %v1789_v30  ;;  %832 = vmatmul.mubr.f32.vlgmr.msra.gmra.mrb[2].mxu0 %v2365_v29  ;;  %v1123_v29 = vld [vmem:[#allocation7 + $0x88] sm:$0xff] }
 0x17e   : > { %1796 = vmatpush1.bf16.msra.mxu0 %v1795_v15  ;;  %1234 = vmatprep.mubr.f32.mxu0 %v2034_v32  ;;  %v1127_v30 = vld [vmem:[#allocation7 + $0xa8] sm:$0xff]  ;;  %v1146_v15 = vld [vmem:[#allocation7 + $0x140] sm:$0xff] }
 0x17f   : > { %1582 = vmatmul.mubr.msk.f32.vlgmr.msra.gmra.mrb[4].mxu1 %vm481_vm2, %v491_v49  ;;  %1798 = vmatprep.subr.bf16.mxu0 %v1797_v22  ;;  %v1801_v31 = vpack.c.bf16 %v1127_v30, %v1123_v29  ;;  %v1847_v22 = vpack.c.bf16 %v1152_v20, %v1148_v19  ;;  %v1160_v30 = vld [vmem:[#allocation7 + $0x1b0] sm:$0xff] }
 0x180   : > { %1792 = vmatpush1.bf16.msra.mxu1 %v1791_v33  ;;  %1064 = vmatprep.mubr.f32.mxu1 %v2034_v32  ;;  %v1122_v33 = vld [vmem:[#allocation7 + $0x80] sm:$0xff] }
 0x181   : > { %1826 = vmatprep.subr.bf16.mxu1 %v1825_v14  ;;  %v1803_v36 = vpack.c.bf16 %v1126_v34, %v1122_v33  ;;  %v1153_v14 = vld [vmem:[#allocation7 + $0x178] sm:$0xff] }
 0x182   : > { %1800 = vmatpush1.bf16.msra.mxu0 %v1799_v28  ;;  %v1845_v17 = vpack.c.bf16 %v1153_v14, %v1149_v12  ;;  %v1158_v28 = vld [vmem:[#allocation7 + $0x1a0] sm:$0xff]  ;;  %v1165_v34 = vld [vmem:[#allocation7 + $0x1d8] sm:$0xff] }
 0x183   : > { %1583 = vmatmul.mubr.msk.f32.vlgmr.msra.gmra.mrb[0].mxu1 %vm481_vm2, %v491_v49  ;;  %v1129_v49 = vld [vmem:[#allocation7 + $0xb8] sm:$0xff]  ;;  %1802 = vmatprep.subr.bf16.mxu0 %v1801_v31  ;;  %v1819_v29 = vpack.c.bf16 %v1158_v28, %v1154_v46  ;;  %v1167_v31 = vld [vmem:[#allocation7 + $0x1e8] sm:$0xff] }
 0x184   : > { %1305 = vmatprep.mubr.f32.mxu1 %v2034_v32  ;;  %1828 = vmatpush1.bf16.msra.mxu1 %v1827_v18  ;;  %v1833_v35 = vpack.c.bf16 %v1129_v49, %v1125_v48  ;;  %v1815_v18 = vpack.c.bf16 %v1150_v16, %v1146_v15  ;;  %v1163_v48 = vld [vmem:[#allocation7 + $0x1c8] sm:$0xff]  ;;  %v1368_v46 = vld [vmem:[%s2495_s7 + $0x8] sm:$0xff] }
 0x185   : > { %1830 = vmatprep.subr.bf16.mxu1 %v1829_v25  ;;  %v1161_v25 = vld [vmem:[#allocation7 + $0x1b8] sm:$0xff]  ;;  %v1821_v33 = vpack.c.bf16 %v1167_v31, %v1163_v48  ;;  %v1371_v31 = vld [vmem:[%s2495_s7 + $0x20] sm:$0xff] }
 0x186   : > { %1804 = vmatpush1.bf16.msra.mxu0 %v1803_v36  ;;  %v1849_v27 = vpack.c.bf16 %v1161_v25, %v1157_v24  ;;  %v1162_v36 = vld [vmem:[#allocation7 + $0x1c0] sm:$0xff] }
 0x187   : > { %1806 = vmatprep.subr.bf16.mxu0 %v1805_v53  ;;  %v1823_v51 = vpack.c.bf16 %v1166_v39, %v1162_v36  ;;  %v1376_v39 = vld [vmem:[%s2495_s7 + $0x48] sm:$0xff] }
 0x188   : > { %1832 = vmatpush1.bf16.msra.mxu1 %v1831_v47  ;;  %v1156_v47 = vld [vmem:[#allocation7 + $0x190] sm:$0xff] }
 0x189   : > { %1834 = vmatprep.subr.bf16.mxu1 %v1833_v35  ;;  %v1851_v49 = vpack.c.bf16 %v1160_v30, %v1156_v47  ;;  %v1169_v35 = vld [vmem:[#allocation7 + $0x1f8] sm:$0xff]  ;;  %v2035_v47 = vmov 0.0|0.0   ;;  %v1370_v30 = vld [vmem:[%s2495_s7 + $0x18] sm:$0xff] }
 0x18a   : > { %1808 = vmatpush1.bf16.msra.mxu0 %v1807_v58  ;;  %v1853_v37 = vpack.c.bf16 %v1169_v35, %v1165_v34  ;;  %v1373_v34 = vld [vmem:[%s2495_s7 + $0x30] sm:$0xff]  ;;  %v1374_v35 = vld [vmem:[%s2495_s7 + $0x38] sm:$0xff] }
 0x18b   : > { %1810 = vmatprep.subr.bf16.mxu0 %v1809_v1  ;;  %v1867_v36 = vpack.c.bf16 %v1374_v35, %v1373_v34 }
 0x18c   : > { %1836 = vmatpush1.bf16.msra.mxu1 %v1835_v42  ;;  %v1164_v42 = vld [vmem:[#allocation7 + $0x1d0] sm:$0xff] }
 0x18d   : > { %1838 = vmatprep.subr.bf16.mxu1 %v1837_v57  ;;  %v1855_v52 = vpack.c.bf16 %v1168_v50, %v1164_v42  ;;  %v1377_v50 = vld [vmem:[%s2495_s7 + $0x50] sm:$0xff] }
 0x18e   : > { %1812 = vmatpush1.bf16.msra.mxu0 %v1811_v7 }
 0x18f   : > { %1814 = vmatprep.subr.bf16.mxu0 %v1813_v13 }
 0x190   : > { %1840 = vmatpush1.bf16.msra.mxu1 %v1839_v61 }
 0x191   : > { %1842 = vmatprep.subr.bf16.mxu1 %v1841_v5 }
 0x192   : > { %1816 = vmatpush1.bf16.msra.mxu0 %v1815_v18 }
 0x193   : > { %1818 = vmatprep.subr.bf16.mxu0 %v1817_v26 }
 0x194   : > { %1844 = vmatpush1.bf16.msra.mxu1 %v1843_v10 }
 0x195   : > { %1846 = vmatprep.subr.bf16.mxu1 %v1845_v17  ;;  %v1098_v17 = vld [vmem:[#allocation3] sm:$0xff] }
 0x196   : > { %1820 = vmatpush1.bf16.msra.mxu0 %v1819_v29  ;;  %v1369_v29 = vld [vmem:[%s2495_s7 + $0x10] sm:$0xff] }
 0x197   : > { %1822 = vmatprep.subr.bf16.mxu0 %v1821_v33  ;;  %v1861_v48 = vpack.c.bf16 %v1370_v30, %v1369_v29  ;;  %v1585_v30 = vld [vmem:[%s2496_s8] ss:$0 sm:$0xff] }
 0x198   : > { %1848 = vmatpush1.bf16.msra.mxu1 %v1847_v22 }
 0x199   : > { %1850 = vmatprep.subr.bf16.mxu1 %v1849_v27  ;;  %v1367_v27 = vld [vmem:[%s2495_s7] sm:$0xff] }
 0x19a   : > { %1824 = vmatpush1.bf16.msra.mxu0 %v1823_v51  ;;  %v1858_v28 = vpack.c.bf16 %v1368_v46, %v1367_v27  ;;  %v1378_v51 = vld [vmem:[%s2495_s7 + $0x58] sm:$0xff] }
 0x19b   : > { %1857 = vmatprep.subr.bf16.mxu0 %v2035_v47 }
 0x19c   : > { %1852 = vmatpush1.bf16.msra.mxu1 %v1851_v49  ;;  %v1372_v49 = vld [vmem:[%s2495_s7 + $0x28] sm:$0xff] }
 0x19d   : > { %1854 = vmatprep.subr.bf16.mxu1 %v1853_v37  ;;  %v1864_v33 = vpack.c.bf16 %v1372_v49, %v1371_v31  ;;  %v1375_v37 = vld [vmem:[%s2495_s7 + $0x40] sm:$0xff] }
 0x19e   : > { %v1870_v42 = vpack.c.bf16 %v1376_v39, %v1375_v37 }
 0x1a0   : > { %1856 = vmatpush1.bf16.msra.mxu1 %v1855_v52  ;;  %v1873_v52 = vpack.c.bf16 %v1378_v51, %v1377_v50 }
 0x230   : > { %v624_v53 = vpop.f32.mrb[0].mxu0 }
 0x231   : > { %v626_v54 = vpop.f32.mrb[1].mxu0  ;;  %v1881_v57 = vadd.f32 %v914_v55, %v624_v53  ;;  %v1379_v53 = vld [vmem:[%s2495_s7 + $0x60] sm:$0xff] }
 0x232   : > { %v1883_v58 = vadd.f32 %v915_v56, %v626_v54  ;;  %v1380_v54 = vld [vmem:[%s2495_s7 + $0x68] sm:$0xff]  ;;  %v1381_v56 = vld [vmem:[%s2495_s7 + $0x70] sm:$0xff] }
 0x233   : > { %v1876_v55 = vpack.c.bf16 %v1380_v54, %v1379_v53 }
 0x252   : > { %v995_v59 = vpop.f32.mrb[4].mxu1 }
 0x253   : > { %v1882_v60 = vadd.f32 %v1881_v57, %v995_v59  ;;  %v997_v61 = vpop.f32.mrb[5].mxu1  ;;  %v1382_v57 = vld [vmem:[%s2495_s7 + $0x78] sm:$0xff]  ;;  %v2037_v59 = vmov 0  }
 0x254   : > { %v1884_v62 = vadd.f32 %v1883_v58, %v997_v61  ;;  %v1879_v58 = vpack.c.bf16 %v1382_v57, %v1381_v56  ;;  %1911 = vset.pattern.permute.xlu1 %v2037_v59  ;;  %1912 = vset.pattern.permute.xlu0 %v2037_v59  ;;  %v1584_v61 = vld [vmem:[%s2494_s6 + $0x4] sm:$0xf] }
 0x255   : > { %v1079_v63 = vsub.f32 0.0, %v1882_v60  ;;  %v2438_v60 = vld [vmem:[%s1486_s14] sm:$0xff] }
 0x256   : > { %v1085_v1 = vsub.f32 0.0, %v1884_v62  ;;  %v1066_v2 = vpop.f32.mrb[0].mxu1  ;;  %1498 = vperm.xlu1 %1911, %v2438_v60   ;;  %v1318_v62 = vrot.slane %v1584_v61, %v97_v41  ;;  %vm1505_vm8 = vcmp.ne.s32.totalorder %v2438_v60, 0 }
 0x257   : > { %v1080_v3 = vmul.f32 1.442695, %v1079_v63  ;;  %v1068_v4 = vpop.f32.mrb[1].mxu1  ;;  %v1073_v6 = vadd.f32 %v1066_v2, %v916_v9  ;;  %v1322_v63 = vrot.slane %v1584_v61, %v101_v44 }
 0x258   : > { %v1086_v5 = vmul.f32 1.442695, %v1085_v1  ;;  %v1074_v7 = vadd.f32 %v1068_v4, %v917_v0 }
 0x259   : > { %1913 = vpow2.f32 %v1080_v3 }
 0x25a   : > { %1915 = vpow2.f32 %v1086_v5  ;;  %v1092_v8 = vsub.f32 0.0, %v1074_v7  ;;  %v1330_v7 = vrot.slane %v1584_v61, %v109_v45 }
 0x25c   : > { %v1093_v10 = vmul.f32 1.442695, %v1092_v8 }
 0x25e   : > { %1917 = vpow2.f32 %v1093_v10 }
 0x25f   : > { %1919 = vtanh.f32 %v1073_v6 }
 0x263   : > { %v1914_v11 = vpop.eup %1913 }
 0x264   : > { %v1916_v12 = vpop.eup %1915  ;;  %v1082_v13 = vadd.f32 1.0, %v1914_v11 }
 0x265   : > { %v1088_v14 = vadd.f32 1.0, %v1916_v12 }
 0x266   : > { %1921 = vrcp.f32 %v1082_v13  ;;  %v1326_v13 = vrot.slane %v1584_v61, %v105_v43 }
 0x267   : > { %1923 = vrcp.f32 %v1088_v14 }
 0x268   : > { %v1918_v15 = vpop.eup %1917 }
 0x269   : > { %v1920_v16 = vpop.eup %1919  ;;  %v1095_v21 = vadd.f32 1.0, %v1918_v15 }
 0x26b   : > { %1925 = vrcp.f32 %v1095_v21 }
 0x270   : > { %v1922_v18 = vpop.eup %1921 }
 0x271   : > { %v1924_v19 = vpop.eup %1923  ;;  %v1100_v20 = vmul.f32 %v1922_v18, %v1920_v16 }
 0x272   : > { %v1099_v22 = vmul.f32 %v1924_v19, %v1098_v17 }
 0x274   : > { %v1101_v23 = vadd.f32 %v1100_v20, %v1099_v22  ;;  %v1359_v22 = vld [vmem:[#allocation3 + $0x8] sm:$0xff] }
 0x275   : > { %v1926_v24 = vpop.eup %1925 }
 0x276   : > { %1927 = vtanh.f32 %v1101_v23  ;;  %1104 = vst [vmem:[#allocation3] sm:$0xff] %v1101_v23 }
 0x280   : > { %v1928_v25 = vpop.eup %1927 }
 0x281   : > { %v1103_v26 = vmul.f32 %v1928_v25, %v1926_v24 }
 0x283   : > { %1105 = vst [vmem:[#allocation2] sm:$0xff] %v1103_v26  ;;  %1235 = vmatmul.mubr.f32.vlgmr.msra.gmra.mrb[2].mxu0 %v1103_v26  ;;  %1306 = vmatmul.mubr.f32.vlgmr.msra.gmra.mrb[2].mxu1 %v1103_v26 }
 0x284   : > { %1859 = vmatpush3.bf16.msra.mxu0 %v1858_v28  ;;  %1638 = vmatprep.mubr.msk.f32.mxu0 %vm2036_vm4, %v2034_v32 }
 0x285   : > { %1860 = vmatprep.subr.bf16.mxu0 %v2035_v47 }
 0x288   : > { %1862 = vmatpush3.bf16.msra.mxu0 %v1861_v48 }
 0x289   : > { %1863 = vmatprep.subr.bf16.mxu0 %v2035_v47 }
 0x28c   : > { %1865 = vmatpush3.bf16.msra.mxu0 %v1864_v33 }
 0x28d   : > { %1866 = vmatprep.subr.bf16.mxu0 %v2035_v47 }
 0x290   : > { %1868 = vmatpush3.bf16.msra.mxu0 %v1867_v36 }
 0x291   : > { %1869 = vmatprep.subr.bf16.mxu0 %v2035_v47 }
 0x294   : > { %1871 = vmatpush3.bf16.msra.mxu0 %v1870_v42 }
 0x295   : > { %1872 = vmatprep.subr.bf16.mxu0 %v2035_v47 }
 0x298   : > { %1874 = vmatpush3.bf16.msra.mxu0 %v1873_v52 }
 0x299   : > { %1875 = vmatprep.subr.bf16.mxu0 %v2035_v47 }
 0x29c   : > { %1877 = vmatpush3.bf16.msra.mxu0 %v1876_v55 }
 0x29d   : > { %1878 = vmatprep.subr.bf16.mxu0 %v2035_v47 }
 0x2a0   : > { %1880 = vmatpush3.bf16.msra.mxu0 %v1879_v58 }
 0x2d5   : > { %v1499_v54 = vpop.permute.xlu1 %1498 }
 0x2d6   : > { %vm1500_vm6 = vcmp.eq.s32.totalorder %v2256_v38, %v1499_v54 }
 0x356   : > { %v1236_v0 = vpop.f32.mrb[2].mxu0  ;;  %v1307_v1 = vpop.f32.mrb[2].mxu1 }
 0x357   : > { %v1335_v2 = vadd.f32 %v1318_v62, %v1236_v0  ;;  %v1238_v3 = vpop.f32.mrb[3].mxu0  ;;  %v1309_v4 = vpop.f32.mrb[3].mxu1  ;;  %v1337_v15 = vadd.f32 %v1326_v13, %v1307_v1 }
 0x358   : > { %v1336_v5 = vadd.f32 %v1322_v63, %v1238_v3  ;;  %v1338_v11 = vadd.f32 %v1330_v7, %v1309_v4  ;;  %v1587_v7 = vsel %vm1505_vm8, 1.0, %v2034_v32 }
 0x359   : > { %v1339_v8 = vsub.f32 0.0, %v1335_v2 }
 0x35a   : > { %v1345_v9 = vsub.f32 0.0, %v1336_v5  ;;  %v1352_v12 = vsub.f32 0.0, %v1338_v11 }
 0x35b   : > { %v1340_v10 = vmul.f32 1.442695, %v1339_v8 }
 0x35c   : > { %v1346_v6 = vmul.f32 1.442695, %v1345_v9  ;;  %v1353_v14 = vmul.f32 1.442695, %v1352_v12 }
 0x35d   : > { %1929 = vpow2.f32 %v1340_v10 }
 0x35e   : > { %1931 = vpow2.f32 %v1346_v6  ;;  %v1508_v6 = vld [vmem:[#allocation5] sm:$0xff] }
 0x35f   : > { %1933 = vpow2.f32 %v1353_v14 }
 0x360   : > { %1935 = vtanh.f32 %v1337_v15 }
 0x367   : > { %v1930_v16 = vpop.eup %1929 }
 0x368   : > { %v1932_v17 = vpop.eup %1931  ;;  %v1342_v18 = vadd.f32 1.0, %v1930_v16 }
 0x369   : > { %v1348_v19 = vadd.f32 1.0, %v1932_v17  ;;  %v1934_v20 = vpop.eup %1933 }
 0x36a   : > { %1937 = vrcp.f32 %v1342_v18  ;;  %v1936_v21 = vpop.eup %1935  ;;  %v1355_v26 = vadd.f32 1.0, %v1934_v20 }
 0x36b   : > { %1939 = vrcp.f32 %v1348_v19 }
 0x36c   : > { %1941 = vrcp.f32 %v1355_v26 }
 0x374   : > { %v1938_v23 = vpop.eup %1937 }
 0x375   : > { %v1940_v24 = vpop.eup %1939  ;;  %v1361_v25 = vmul.f32 %v1938_v23, %v1936_v21 }
 0x376   : > { %v1360_v27 = vmul.f32 %v1940_v24, %v1359_v22  ;;  %v1942_v28 = vpop.eup %1941 }
 0x378   : > { %v1362_v46 = vadd.f32 %v1361_v25, %v1360_v27 }
 0x37a   : > { %1365 = vst [vmem:[#allocation3 + $0x8] sm:$0xff] %v1362_v46  ;;  %1943 = vtanh.f32 %v1362_v46 }
 0x384   : > { %v1944_v47 = vpop.eup %1943 }
 0x385   : > { %v1364_v29 = vmul.f32 %v1944_v47, %v1942_v28 }
 0x387   : > { %1366 = vst [vmem:[#allocation2 + $0x8] sm:$0xff] %v1364_v29  ;;  %1639 = vmatmul.mubr.f32.vlgmr.msra.gmra.mrb[4].mxu0 %v1364_v29 }
 0x45a   : > { %v1456_v48 = vpop.f32.mrb[4].mxu0 }
 0x45b   : > { %v1457_v31 = vadd.f32 %v1585_v30, %v1456_v48  ;;  %v1640_v49 = vpop.f32.mrb[5].mxu0 }
 0x45d   : > { %v1460_v33 = vsel %vm481_vm2, %v1457_v31, -inf  ;;  %v1501_v58 = vsel %vm1500_vm6, %v1457_v31, 0.0 }
 0x45e   : > { %1461 = vmax.xlane.f32.xlu0 %v1460_v33  ;;  %v1502_v59 = vsel %vm481_vm2, %v1501_v58, 0.0 }
 0x4eb   : > { %v1462_v34 = vpop.xlane.xlu0 %1461 }
 0x4ec   : > { %v1488_v35 = vsub.f32 %v1457_v31, %v1462_v34  ;;  %vm1463_vm5 = vcmp.eq.f32.partialorder %v1457_v31, %v1462_v34 }
 0x4ed   : > { %v1464_v36 = vsel %vm1463_vm5, %v2256_v38, 16 }
 0x4ee   : > { %v1465_v37 = vsel %vm481_vm2, %v1464_v36, 2147483647  ;;  %v1489_v39 = vmul.f32 1.442695, %v1488_v35 }
 0x4ef   : > { %v1467_v42 = vshra.s32 %v1465_v37, 16  ;;  %v1466_v53 = vand.u32 65535, %v1465_v37 }
 0x4f0   : > { %1945 = vpow2.f32 %v1489_v39 }
 0x4f1   : > { %v1469_v50 = vcvt.s32.f32 %v1467_v42  ;;  %v1468_v56 = vcvt.s32.f32 %v1466_v53 }
 0x4f3   : > { %1470 = vmin.xlane.f32.xlu0 %v1469_v50 }
 0x4fa   : > { %v1946_v51 = vpop.eup %1945 }
 0x4fb   : > { %v1491_v52 = vsel %vm481_vm2, %v1946_v51, 0.0 }
 0x4fc   : > { %1492 = vadd.xlane.f32.xlu1 %v1491_v52 }
 0x580   : > { %v1471_v55 = vpop.xlane.xlu0 %1470 }
 0x581   : > { %vm1472_vm7 = vcmp.eq.f32.partialorder %v1469_v50, %v1471_v55  ;;  %v1477_v63 = vcvt.f32.s32 %v1471_v55 }
 0x582   : > { %v1473_v57 = vsel %vm1472_vm7, %v1468_v56, inf }
 0x583   : > { %1474 = vmin.xlane.f32.xlu0 %v1473_v57  ;;  %v1478_v2 = vshll.u32 %v1477_v63, 16 }
 0x587   : > { %1503 = vadd.xlane.f32.xlu0 %v1502_v59 }
 0x589   : > { %v1493_v61 = vpop.xlane.xlu1 %1492 }
 0x58a   : > { %1947 = vlog2.f32 %v1493_v61 }
 0x594   : > { %v1948_v62 = vpop.eup %1947 }
 0x595   : > { %v1495_v0 = vmul.f32 0.6931472, %v1948_v62 }
 0x597   : > { %v1496_v5 = vadd.f32 %v1495_v0, %v1462_v34 }
 0x610   : > { %v1475_v1 = vpop.xlane.xlu0 %1474 }
 0x611   : > { %v1476_v3 = vcvt.f32.s32 %v1475_v1 }
 0x613   : > { %v1479_v4 = vadd.s32 %v1478_v2, %v1476_v3 }
 0x614   : > { %v1504_v8 = vpop.xlane.xlu0 %1503 }
 0x615   : > { %vm1480_vm9 = vcmp.eq.s32.totalorder %v2256_v38, %v1479_v4  ;;  %1485 = vst.msk [vmem:[%s1484_s24] sm:$0xff] %vm483_vm0, %v1479_v4  ;;  %v1509_v9 = vsub.f32 %v1496_v5, %v1504_v8  ;;  %489 = sbr.rel (!%p487_p2) target bundleno = 311 (0x137), region = 86 }
 0x616   : > { %v1586_v10 = vsel %vm1480_vm9, 1.0, %v2034_v32 }
 0x617   : > { %1483 = vst.msk [vmem:[#allocation4] sm:$0xff] %vm481_vm2, %v1586_v10  ;;  %v1510_v60 = vmul.f32 %v1587_v7, %v1509_v9 }
 0x619   : > { %v1511_v11 = vadd.f32 %v1510_v60, %v1508_v6 }
 0x61b   : > { %1512 = vst.msk [vmem:[#allocation5] sm:$0xff] %vm483_vm0, %v1511_v11 }
 0x622   :  { %v1513_v12 = vld [vmem:[#allocation5] sm:$0xff] }
 0x623   :  { %v1514_v13 = vsel %vm483_vm0, %v1513_v12, 0.0 }
 0x624   :  { %v1515_v14 = vrot.slane %v1514_v13, 4 }
 0x626   :  { %v1516_v15 = vadd.f32 %v1515_v14, %v1514_v13 }
 0x628   :  { %v1517_v16 = vrot.slane %v1516_v15, 2 }
 0x62a   :  { %v1518_v32 = vadd.f32 %v1517_v16, %v1516_v15 }
 0x62c   :  { %v1519_v17 = vrot.slane %v1518_v32, 1 }
 0x62e   :  { %v1520_v18 = vadd.f32 %v1519_v17, %v1518_v32 }
 0x630   :  { %1522 = vst.msk [vmem:[#allocation12] sm:$0x1] %vm1521_vm10, %v1520_v18 }
 0x631   :  { %2004 = shalt.err (!%p2001_p7)
}
 0x632   :  { %s2005_s6 = scalar_lea.hbm %s2497_s9, 16 }
 0x633   :  { %p2006_p8 = scmp.ne.s32.totalorder %s2497_s9, %s2005_s6  ;;  %p2009_p9 = scmp.lt.u32.totalorder %s2005_s6, %s2497_s9 }
 0x635   :  { %p2011_p10 = pnand %p2009_p9, %p2006_p8 }
 0x637   :  { %2014 = shalt.err (!%p2011_p10)
}
 0x638   :  { %1532 = dma.vmem_to_hbm [thread:$0]  %s1530_s25, 16, %s2497_s9, [#allocation9]  }
 0x639   :  { %2023 = dma.done.wait [#allocation9], 16  }
 0x63a   :  { %2024 = vsyncadd [#allocation9], 4294967280 }
 0x63b   :  { %1540 = vsyncpa [#allocation8], 1 }
 0x63c   :  { %1541 = vsyncpa [#allocation11], 1 }
 0x63d   :  { %1542 = vsyncpa [#allocation9], 1 }

</bundles_post_ra>
